<compile_context>
chip_gen: v5e
topology: v5e:2x2
jax: 0.10.0
libtpu: 0.0.40
codegen_flags: <defaults>
</compile_context>

<pallas_src>
import functools

import jax
import jax.numpy as jnp
from jax.experimental import pallas as pl
from jax.experimental.pallas import tpu as pltpu


def _per_lane_const(c4, vals):
    """Per-lane constant selected by coordinate index c4 = lane % 4."""
    v0, v1, v2, v3 = (float(v) for v in vals)
    if v0 == v1 == v2 == v3:
        return v0
    if v0 == v1 and v2 == v3:
        return jnp.where(c4 < 2, v0, v2)
    return jnp.where(c4 == 0, v0,
                     jnp.where(c4 == 1, v1,
                               jnp.where(c4 == 2, v2, v3)))


def _bbox_kernel(a_ref, r_ref, o_ref, *, std, mean):
    # (rb, cb) tiles; coords interleaved along lanes as [x1, y1, x2, y2, ...].
    a = a_ref[...].astype(jnp.float32)
    d = r_ref[...].astype(jnp.float32)
    cb = a.shape[-1]

    lane = jax.lax.broadcasted_iota(jnp.int32, a.shape, 1)
    c4 = lane & 3                         # 0=x1, 1=y1, 2=x2, 3=y2
    is_lo = c4 < 2                        # lanes holding x1/y1 (dx/dy)
    sign = jnp.where(is_lo, 1.0, -1.0)    # +1 on x1/y1 lanes, -1 on x2/y2

    # Partner lane (other corner of the same anchor) is lane ^ 2.  Rolling by
    # 2 lanes in either direction reaches it on half of the lanes; pick per
    # lane by checking which rotation direction actually lands on lane ^ 2,
    # so the kernel is independent of the hardware rotation convention.
    take_r2 = pltpu.roll(lane, 2, axis=1) == (lane ^ 2)

    def partner(x):
        return jnp.where(take_r2,
                         pltpu.roll(x, 2, axis=1),
                         pltpu.roll(x, cb - 2, axis=1))

    a_p = partner(a)
    center = 0.5 * (a + a_p)              # ctr_x on x lanes, ctr_y on y lanes
    size = sign * (a_p - a)               # width on x lanes, height on y lanes

    d = d * _per_lane_const(c4, std)      # scaled deltas (std baked in)
    if any(float(m) != 0.0 for m in mean):
        d = d + _per_lane_const(c4, mean)
    d_p = partner(d)
    d_center = jnp.where(is_lo, d, d_p)   # dx / dy on every lane
    d_size = jnp.where(is_lo, d_p, d)     # dw / dh on every lane

    pred_center = center + d_center * size
    pred_size = jnp.exp(d_size) * size
    # x1/y1 lanes: center - 0.5*pred_size ; x2/y2 lanes: center + 0.5*pred_size
    o_ref[...] = (pred_center - (0.5 * sign) * pred_size).astype(o_ref.dtype)


def _choose_view(total, max_lane_block):
    """Factor `total` = rows * cols for a metadata-only 2-D view.

    Prefers cols >= 128 (lane-dense blocks), rows >= 8 (full sublane packing)
    and cols % 128 == 0 (no masked edge block), in that order.
    """
    max_cols = min(max_lane_block, total)
    best_view, best_score = None, None
    cols = max_cols - max_cols % 4
    while cols >= 4:
        if total % cols == 0:
            rows = total // cols
            score = (cols >= 128, rows >= 8, cols % 128 == 0, cols)
            if best_score is None or score > best_score:
                best_view, best_score = (rows, cols), score
            if cols >= 128 and rows >= 8 and cols % 128 == 0:
                break
        cols -= 4
    return best_view


@functools.partial(jax.jit, static_argnames=("mean", "std", "max_lane_block",
                                              "max_block_elems"))
def bbox_transform(anchors, regressions, mean=None, std=None, *,
                   max_lane_block=8192, max_block_elems=256 * 1024):
    """EfficientDet BBoxTransform.forward: decode regression deltas vs anchors."""
    mean = (0.0, 0.0, 0.0, 0.0) if mean is None else tuple(float(v) for v in mean)
    std = (0.1, 0.1, 0.2, 0.2) if std is None else tuple(float(v) for v in std)
    assert max_lane_block >= 128 and max_lane_block % 128 == 0

    B, N, C = anchors.shape
    assert C == 4 and regressions.shape == anchors.shape

    # ---- metadata-only 2-D view; box coords stay interleaved along lanes ----
    total = 4 * B * N
    rows, cols = _choose_view(total, max_lane_block)
    a2 = anchors.reshape(rows, cols)
    r2 = regressions.reshape(rows, cols)

    # Tiny-input fallback only: below one vreg of lanes, pad to 128 (negligible).
    pad = 128 - cols if cols < 128 else 0
    if pad:
        a2 = jnp.pad(a2, ((0, 0), (0, pad)))
        r2 = jnp.pad(r2, ((0, 0), (0, pad)))
    pcols = cols + pad

    # Lane block: multiple of 128; a ragged tail becomes one partial (masked)
    # block instead of a padded HBM copy.  Row block: full extent if it fits
    # the per-step budget, else a multiple of 8.
    cb = min(max_lane_block, (pcols // 128) * 128)
    row_budget = max(8, (max_block_elems // cb) // 8 * 8)
    rb = rows if rows <= row_budget else row_budget
    grid = (pl.cdiv(rows, rb), pl.cdiv(pcols, cb))

    kernel = functools.partial(_bbox_kernel, std=std, mean=mean)
    spec = pl.BlockSpec((rb, cb), lambda i, j: (i, j))

    out2 = pl.pallas_call(
        kernel,
        out_shape=jax.ShapeDtypeStruct((rows, pcols), jnp.float32),
        grid=grid,
        in_specs=[spec, spec],
        out_specs=spec,
        compiler_params=pltpu.CompilerParams(
            dimension_semantics=("parallel", "parallel")),
    )(a2, r2)

    if pad:
        out2 = out2[:, :cols]
    return out2.reshape(B, N, 4)


def _bbox_transform_ref(anchors, regressions,
                        mean=(0.0, 0.0, 0.0, 0.0), std=(0.1, 0.1, 0.2, 0.2)):
    widths = anchors[:, :, 2] - anchors[:, :, 0]
    heights = anchors[:, :, 3] - anchors[:, :, 1]
    ctr_x = anchors[:, :, 0] + 0.5 * widths
    ctr_y = anchors[:, :, 1] + 0.5 * heights
    dx = regressions[:, :, 0] * std[0] + mean[0]
    dy = regressions[:, :, 1] * std[1] + mean[1]
    dw = regressions[:, :, 2] * std[2] + mean[2]
    dh = regressions[:, :, 3] * std[3] + mean[3]
    pred_ctr_x = ctr_x + dx * widths
    pred_ctr_y = ctr_y + dy * heights
    pred_w = jnp.exp(dw) * widths
    pred_h = jnp.exp(dh) * heights
    return jnp.stack([pred_ctr_x - 0.5 * pred_w,
                      pred_ctr_y - 0.5 * pred_h,
                      pred_ctr_x + 0.5 * pred_w,
                      pred_ctr_y + 0.5 * pred_h], axis=2)


if __name__ == "__main__":
    key = jax.random.PRNGKey(0)
    k1, k2, k3, k4, k5, k6 = jax.random.split(key, 6)

    # ---- main check: lane-aligned anchor count, default mean/std -----------
    B, N = 2, 2048
    ctr = jax.random.uniform(k1, (B, N, 2), jnp.float32, 10.0, 100.0)
    wh = jax.random.uniform(k2, (B, N, 2), jnp.float32, 4.0, 32.0)
    anchors = jnp.concatenate([ctr - 0.5 * wh, ctr + 0.5 * wh], axis=2)
    regressions = jax.random.normal(k3, (B, N, 4), jnp.float32)

    ref = _bbox_transform_ref(anchors, regressions)
    out = jax.block_until_ready(bbox_transform(anchors, regressions))
    assert out.shape == (B, N, 4) and out.dtype == jnp.float32
    assert jnp.allclose(out, ref, atol=1e-4, rtol=1e-4)

    # Same inputs through a multi-step grid (small blocks) to exercise tiling.
    out_small = jax.block_until_ready(
        bbox_transform(anchors, regressions,
                       max_lane_block=512, max_block_elems=4096))
    assert jnp.allclose(out_small, ref, atol=1e-4, rtol=1e-4)

    # ---- ragged anchor count (4*B*N not a multiple of 128) + custom mean/std
    # Exercises the partial-lane-block path (no padding copies).
    B2, N2 = 2, 300
    ctr2 = jax.random.uniform(k4, (B2, N2, 2), jnp.float32, 10.0, 100.0)
    wh2 = jax.random.uniform(k5, (B2, N2, 2), jnp.float32, 4.0, 32.0)
    anchors2 = jnp.concatenate([ctr2 - 0.5 * wh2, ctr2 + 0.5 * wh2], axis=2)
    regressions2 = jax.random.normal(k6, (B2, N2, 4), jnp.float32)
    mean2 = (0.05, -0.1, 0.0, 0.2)
    std2 = (0.15, 0.1, 0.25, 0.2)

    ref2 = _bbox_transform_ref(anchors2, regressions2, mean2, std2)
    out2 = jax.block_until_ready(
        bbox_transform(anchors2, regressions2, mean=mean2, std=std2,
                       max_lane_block=512))
    assert jnp.allclose(out2, ref2, atol=1e-4, rtol=1e-4)

    print("KERNEL_OK")
</pallas_src>

<mosaic_0001>
module attributes {stable_mosaic.version = 11 : i64} {
  func.func @_bbox_kernel(%arg0: i32, %arg1: i32, %arg2: memref<8x2048xf32, #tpu.memory_space<vmem>>, %arg3: memref<8x2048xf32, #tpu.memory_space<vmem>>, %arg4: memref<8x2048xf32, #tpu.memory_space<vmem>>) attributes {dimension_semantics = [#tpu.dimension_semantics<parallel>, #tpu.dimension_semantics<parallel>], iteration_bounds = array<i64: 1, 1>, scalar_prefetch = 0 : i64, scratch_operands = 0 : i64, tpu.core_type = #tpu.core_type<tc>, window_params = [{transform_indices = @transform_0, window_bounds = array<i64: 8, 2048>}, {transform_indices = @transform_1, window_bounds = array<i64: 8, 2048>}, {transform_indices = @transform_2, window_bounds = array<i64: 8, 2048>}]} {
    %c0 = arith.constant 0 : index
    %c0_0 = arith.constant 0 : index
    %0 = vector.load %arg2[%c0, %c0_0] : memref<8x2048xf32, #tpu.memory_space<vmem>>, vector<8x2048xf32>
    %c0_1 = arith.constant 0 : index
    %c0_2 = arith.constant 0 : index
    %1 = vector.load %arg3[%c0_1, %c0_2] : memref<8x2048xf32, #tpu.memory_space<vmem>>, vector<8x2048xf32>
    %2 = tpu.iota {dimensions = array<i32: 1>} : vector<8x2048xi32>
    %c3_i32 = arith.constant 3 : i32
    %3 = vector.broadcast %c3_i32 : i32 to vector<8x2048xi32>
    %4 = arith.andi %2, %3 : vector<8x2048xi32>
    %c2_i32 = arith.constant 2 : i32
    %5 = vector.broadcast %c2_i32 : i32 to vector<8x2048xi32>
    %6 = arith.cmpi slt, %4, %5 : vector<8x2048xi32>
    %cst = arith.constant 1.000000e+00 : f32
    %cst_3 = arith.constant -1.000000e+00 : f32
    %7 = vector.broadcast %cst : f32 to vector<8x2048xf32>
    %8 = vector.broadcast %cst_3 : f32 to vector<8x2048xf32>
    %9 = arith.select %6, %7, %8 : vector<8x2048xi1>, vector<8x2048xf32>
    %c2_i32_4 = arith.constant 2 : i32
    %10 = tpu.dynamic_rotate %2 by %c2_i32_4 dim 1 : vector<8x2048xi32>, i32 -> vector<8x2048xi32>
    %c2_i32_5 = arith.constant 2 : i32
    %11 = vector.broadcast %c2_i32_5 : i32 to vector<8x2048xi32>
    %12 = arith.xori %2, %11 : vector<8x2048xi32>
    %13 = arith.cmpi eq, %10, %12 : vector<8x2048xi32>
    %c2_i32_6 = arith.constant 2 : i32
    %14 = tpu.dynamic_rotate %0 by %c2_i32_6 dim 1 : vector<8x2048xf32>, i32 -> vector<8x2048xf32>
    %c2046_i32 = arith.constant 2046 : i32
    %15 = tpu.dynamic_rotate %0 by %c2046_i32 dim 1 : vector<8x2048xf32>, i32 -> vector<8x2048xf32>
    %16 = arith.select %13, %14, %15 : vector<8x2048xi1>, vector<8x2048xf32>
    %17 = arith.addf %0, %16 : vector<8x2048xf32>
    %cst_7 = arith.constant 5.000000e-01 : f32
    %18 = vector.broadcast %cst_7 : f32 to vector<8x2048xf32>
    %19 = arith.mulf %18, %17 : vector<8x2048xf32>
    %20 = arith.subf %16, %0 : vector<8x2048xf32>
    %21 = arith.mulf %9, %20 : vector<8x2048xf32>
    %c2_i32_8 = arith.constant 2 : i32
    %22 = vector.broadcast %c2_i32_8 : i32 to vector<8x2048xi32>
    %23 = arith.cmpi slt, %4, %22 : vector<8x2048xi32>
    %cst_9 = arith.constant 1.000000e-01 : f32
    %cst_10 = arith.constant 2.000000e-01 : f32
    %24 = vector.broadcast %cst_9 : f32 to vector<8x2048xf32>
    %25 = vector.broadcast %cst_10 : f32 to vector<8x2048xf32>
    %26 = arith.select %23, %24, %25 : vector<8x2048xi1>, vector<8x2048xf32>
    %27 = arith.mulf %1, %26 : vector<8x2048xf32>
    %c2_i32_11 = arith.constant 2 : i32
    %28 = tpu.dynamic_rotate %27 by %c2_i32_11 dim 1 : vector<8x2048xf32>, i32 -> vector<8x2048xf32>
    %c2046_i32_12 = arith.constant 2046 : i32
    %29 = tpu.dynamic_rotate %27 by %c2046_i32_12 dim 1 : vector<8x2048xf32>, i32 -> vector<8x2048xf32>
    %30 = arith.select %13, %28, %29 : vector<8x2048xi1>, vector<8x2048xf32>
    %31 = arith.select %6, %27, %30 : vector<8x2048xi1>, vector<8x2048xf32>
    %32 = arith.select %6, %30, %27 : vector<8x2048xi1>, vector<8x2048xf32>
    %33 = arith.mulf %31, %21 : vector<8x2048xf32>
    %34 = arith.addf %19, %33 : vector<8x2048xf32>
    %35 = math.exp %32 : vector<8x2048xf32>
    %36 = arith.mulf %35, %21 : vector<8x2048xf32>
    %cst_13 = arith.constant 5.000000e-01 : f32
    %37 = vector.broadcast %cst_13 : f32 to vector<8x2048xf32>
    %38 = arith.mulf %37, %9 : vector<8x2048xf32>
    %39 = arith.mulf %38, %36 : vector<8x2048xf32>
    %40 = arith.subf %34, %39 : vector<8x2048xf32>
    %c0_14 = arith.constant 0 : index
    %c0_15 = arith.constant 0 : index
    %41 = vector.load %arg4[%c0_14, %c0_15] : memref<8x2048xf32, #tpu.memory_space<vmem>>, vector<8x2048xf32>
    tpu.vector_store %arg4[%c0_14, %c0_15], %40 {strides = array<i32>} : memref<8x2048xf32, #tpu.memory_space<vmem>>, vector<8x2048xf32>,
    return
  }
  func.func @transform_0(%arg0: i32, %arg1: i32) -> (i32, i32) {
    %c0_i32 = arith.constant 0 : i32
    return %arg0, %arg1 : i32, i32
  }
  func.func @transform_1(%arg0: i32, %arg1: i32) -> (i32, i32) {
    %c0_i32 = arith.constant 0 : i32
    return %arg0, %arg1 : i32, i32
  }
  func.func @transform_2(%arg0: i32, %arg1: i32) -> (i32, i32) {
    %c0_i32 = arith.constant 0 : i32
    return %arg0, %arg1 : i32, i32
  }
}

</mosaic_0001>

<bundles_post_ra>
// kernel: bbox_transform.1
= control target key start
LH: loop header
LB: loop body
LE: loop exit
PB: predicated region body
PF: predicated region fallthrough
CT: control target
= control target key end

     0   :  { %v43_v0 = vlaneseq  ;;  %s726_s9 = smov 2   ;;  %s727_s15 = smov 126   ;;  %v2396_v37 = vmov 0  ;;  %v2401_v46 = vmov 0  ;;  %v2404_v47 = vmov 0  ;;  %s2225_s0 = inlined_call_operand.vmem [shape: f32[8,2048], index: 0, kind: input, shape index: {}]   ;;  %s2226_s1 = inlined_call_operand.vmem [shape: f32[8,2048], index: 1, kind: input, shape index: {}]   ;;  %s2227_s2 = inlined_call_operand.vmem [shape: f32[8,2048], index: 2, kind: output, shape index: {}]  }
   0x1   :  { %v825_v17 = vld [vmem:[%s2225_s0 + $0x8] sm:$0xff]  ;;  %v830_v18 = vld [vmem:[%s2225_s0] sm:$0xff]  ;;  %v841_v19 = vld [vmem:[%s2225_s0 + $0x10] sm:$0xff]  ;;  %v2232_v49 = vmov 0.2  }
   0x2   :  { %v745_v1 = vand.u32 127, %v43_v0  ;;  %2380 = vst [vmem:[#allocation2_spill] sm:$0xff] %v825_v17  ;;  %v846_v20 = vld [vmem:[%s2225_s0 + $0x20] sm:$0xff]  ;;  %v851_v21 = vld [vmem:[%s2225_s0 + $0x18] sm:$0xff]  ;;  %v862_v22 = vld [vmem:[%s2225_s0 + $0x28] sm:$0xff] }
   0x3   :  { %2381 = vst [vmem:[#allocation3_spill] sm:$0xff] %v830_v18  ;;  %v867_v23 = vld [vmem:[%s2225_s0 + $0x38] sm:$0xff]  ;;  %v872_v24 = vld [vmem:[%s2225_s0 + $0x30] sm:$0xff]  ;;  %v883_v25 = vld [vmem:[%s2225_s0 + $0x40] sm:$0xff] }
   0x4   :  { %108 = vrot.lane.b32.xlu0 %v745_v1, %s726_s9  ;;  %v750_v2 = vadd.s32 512, %v745_v1  ;;  %v753_v3 = vadd.s32 256, %v745_v1  ;;  %v760_v4 = vadd.s32 128, %v745_v1  ;;  %v763_v5 = vadd.s32 640, %v745_v1  ;;  %2382 = vst [vmem:[#allocation4_spill] sm:$0xff] %v841_v19  ;;  %v888_v26 = vld [vmem:[%s2225_s0 + $0x50] sm:$0xff] }
   0x5   :  { %v766_v6 = vadd.s32 384, %v745_v1  ;;  %v775_v7 = vadd.s32 768, %v745_v1  ;;  %v778_v8 = vadd.s32 1024, %v745_v1  ;;  %v781_v9 = vadd.s32 896, %v745_v1  ;;  %2383 = vst [vmem:[#allocation5_spill] sm:$0xff] %v846_v20  ;;  %v893_v27 = vld [vmem:[%s2225_s0 + $0x48] sm:$0xff] }
   0x6   :  { %116 = vrot.lane.b32.xlu2 %v750_v2, %s726_s9  ;;  %112 = vrot.lane.b32.xlu1 %v753_v3, %s726_s9  ;;  %v790_v10 = vadd.s32 1152, %v745_v1  ;;  %v793_v11 = vadd.s32 1408, %v745_v1  ;;  %v796_v12 = vadd.s32 1280, %v745_v1  ;;  %v805_v13 = vadd.s32 1536, %v745_v1  ;;  %2384 = vst [vmem:[#allocation6_spill] sm:$0xff] %v851_v21  ;;  %v904_v28 = vld [vmem:[%s2225_s0 + $0x58] sm:$0xff] }
   0x7   :  { %v808_v14 = vadd.s32 1792, %v745_v1  ;;  %v811_v15 = vadd.s32 1664, %v745_v1  ;;  %v820_v16 = vadd.s32 1920, %v745_v1  ;;  %2385 = vst [vmem:[#allocation7_spill] sm:$0xff] %v862_v22  ;;  %v909_v29 = vld [vmem:[%s2225_s0 + $0x68] sm:$0xff]  ;;  %v914_v30 = vld [vmem:[%s2225_s0 + $0x60] sm:$0xff] }
   0x8   :  { %2386 = vst [vmem:[#allocation8_spill] sm:$0xff] %v867_v23  ;;  %v925_v31 = vld [vmem:[%s2225_s0 + $0x70] sm:$0xff]  ;;  %v930_v32 = vld [vmem:[%s2225_s0 + $0x78] sm:$0xff]  ;;  %v162_v34 = vxor.u32 2, %v763_v5  ;;  %vm2320_vm0 = vcmp.lt.s32.totalorder %v745_v1, 2  ;;  %v60_v40 = vand.u32 3, %v745_v1 }
   0x9   :  { %2387 = vst [vmem:[#allocation9_spill] sm:$0xff] %v872_v24  ;;  %v62_v41 = vand.u32 3, %v753_v3  ;;  %v61_v42 = vand.u32 3, %v760_v4  ;;  %v27_v48 = vld [vmem:[%s2226_s1] sm:$0xff]  ;;  %v63_v51 = vand.u32 3, %v766_v6  ;;  %v28_v55 = vld [vmem:[%s2226_s1 + $0x8] sm:$0xff] }
   0xa   :  { %2388 = vst [vmem:[#allocation10_spill] sm:$0xff] %v883_v25  ;;  %vm979_vm2 = vcmp.lt.s32.totalorder %v60_v40, 2  ;;  %v29_v57 = vld [vmem:[%s2226_s1 + $0x10] sm:$0xff]  ;;  %v64_v59 = vand.u32 3, %v750_v2  ;;  %v65_v60 = vand.u32 3, %v763_v5 }
   0xb   :  { %2389 = vst [vmem:[#allocation11_spill] sm:$0xff] %v888_v26  ;;  %vm983_vm3 = vcmp.lt.s32.totalorder %v62_v41, 2  ;;  %vm987_vm4 = vcmp.lt.s32.totalorder %v61_v42, 2  ;;  %v366_v50 = vsel %vm979_vm2, 0.1, %v2232_v49  ;;  %vm1039_vm5 = vcmp.lt.s32.totalorder %v63_v51, 2 }
   0xc   :  { %110 = vrot.lane.b32.xlu0 %v760_v4, %s726_s9  ;;  %2390 = vst [vmem:[#allocation12_spill] sm:$0xff] %v893_v27  ;;  %v2402_v46 = vsel %vm983_vm3, 4294967295, %v2401_v46  ;;  %v2405_v47 = vsel %vm987_vm4, 4294967295, %v2404_v47  ;;  %v367_v56 = vsel %vm987_vm4, 0.1, %v2232_v49  ;;  %v1029_v63 = vmul.f32 %v366_v50, %v27_v48 }
   0xd   :  { %2391 = vst [vmem:[#allocation13_spill] sm:$0xff] %v904_v28  ;;  %v368_v58 = vsel %vm983_vm3, 0.1, %v2232_v49  ;;  %v1043_v40 = vmul.f32 %v367_v56, %v28_v55  ;;  %vm1047_vm6 = vcmp.lt.s32.totalorder %v64_v59, 2  ;;  %v2413_v41 = vmov 0  ;;  %v32_v56 = vld [vmem:[%s2226_s1 + $0x28] sm:$0xff] }
   0xe   :  { %118 = vrot.lane.b32.xlu2 %v763_v5, %s726_s9  ;;  %114 = vrot.lane.b32.xlu1 %v766_v6, %s726_s9  ;;  %2392 = vst [vmem:[#allocation14_spill] sm:$0xff] %v909_v29  ;;  %v1045_v5 = vmul.f32 %v368_v58, %v29_v57  ;;  %v2414_v41 = vsel %vm1047_vm6, 4294967295, %v2413_v41  ;;  %vm1051_vm7 = vcmp.lt.s32.totalorder %v65_v60, 2  ;;  %v2416_v42 = vmov 0 }
   0xf   :  { %2393 = vst [vmem:[#allocation15_spill] sm:$0xff] %v914_v30  ;;  %v2417_v42 = vsel %vm1051_vm7, 4294967295, %v2416_v42  ;;  %v66_v48 = vand.u32 3, %v775_v7  ;;  %v370_v55 = vsel %vm1047_vm6, 0.1, %v2232_v49  ;;  %v68_v58 = vand.u32 3, %v778_v8 }
  0x10   :  { %2394 = vst [vmem:[#allocation16_spill] sm:$0xff] %v925_v31  ;;  %v371_v57 = vsel %vm1051_vm7, 0.1, %v2232_v49 }
  0x11   :  { %2395 = vst [vmem:[#allocation17_spill] sm:$0xff] %v930_v32  ;;  %vm1099_vm8 = vcmp.lt.s32.totalorder %v66_v48, 2  ;;  %vm1107_vm9 = vcmp.lt.s32.totalorder %v68_v58, 2  ;;  %v33_v48 = vld [vmem:[%s2226_s1 + $0x30] sm:$0xff]  ;;  %v34_v58 = vld [vmem:[%s2226_s1 + $0x38] sm:$0xff] }
  0x12   :  { %2403 = vst [vmem:[#allocation19_spill] sm:$0xff] %v2402_v46 }
  0x13   :  { %2406 = vst [vmem:[#allocation20_spill] sm:$0xff] %v2405_v47 }
  0x14   :  { %120 = vrot.lane.b32.xlu0 %v775_v7, %s726_s9  ;;  %2407 = vst [vmem:[#allocation21_spill] sm:$0xff] %v1029_v63 }
  0x15   :  { %2411 = vst [vmem:[#allocation23_spill] sm:$0xff] %v1043_v40 }
  0x16   :  { %124 = vrot.lane.b32.xlu2 %v778_v8, %s726_s9  ;;  %122 = vrot.lane.b32.xlu1 %v781_v9, %s726_s9  ;;  %2412 = vst [vmem:[#allocation24_spill] sm:$0xff] %v1045_v5 }
  0x17   :  { %2415 = vst [vmem:[#allocation25_spill] sm:$0xff] %v2414_v41 }
  0x18   :  { %2418 = vst [vmem:[#allocation26_spill] sm:$0xff] %v2417_v42 }
  0x1c   :  { %126 = vrot.lane.b32.xlu0 %v790_v10, %s726_s9 }
  0x1e   :  { %130 = vrot.lane.b32.xlu2 %v793_v11, %s726_s9  ;;  %128 = vrot.lane.b32.xlu1 %v796_v12, %s726_s9 }
  0x24   :  { %132 = vrot.lane.b32.xlu0 %v805_v13, %s726_s9 }
  0x26   :  { %136 = vrot.lane.b32.xlu2 %v808_v14, %s726_s9  ;;  %134 = vrot.lane.b32.xlu1 %v811_v15, %s726_s9 }
  0x2c   :  { %138 = vrot.lane.b32.xlu0 %v820_v16, %s726_s9 }
  0x2e   :  { %191 = vrot.lane.b32.xlu2 %v825_v17, %s726_s9  ;;  %189 = vrot.lane.b32.xlu1 %v830_v18, %s726_s9 }
  0x34   :  { %193 = vrot.lane.b32.xlu0 %v841_v19, %s726_s9 }
  0x36   :  { %197 = vrot.lane.b32.xlu2 %v846_v20, %s726_s9  ;;  %195 = vrot.lane.b32.xlu1 %v851_v21, %s726_s9 }
  0x3c   :  { %199 = vrot.lane.b32.xlu0 %v862_v22, %s726_s9 }
  0x3e   :  { %203 = vrot.lane.b32.xlu2 %v867_v23, %s726_s9  ;;  %201 = vrot.lane.b32.xlu1 %v872_v24, %s726_s9 }
  0x44   :  { %205 = vrot.lane.b32.xlu0 %v883_v25, %s726_s9 }
  0x46   :  { %209 = vrot.lane.b32.xlu2 %v888_v26, %s726_s9  ;;  %207 = vrot.lane.b32.xlu1 %v893_v27, %s726_s9 }
  0x4c   :  { %211 = vrot.lane.b32.xlu0 %v904_v28, %s726_s9 }
  0x4e   :  { %215 = vrot.lane.b32.xlu2 %v909_v29, %s726_s9  ;;  %213 = vrot.lane.b32.xlu1 %v914_v30, %s726_s9 }
  0x54   :  { %217 = vrot.lane.b32.xlu0 %v925_v31, %s726_s9 }
  0x56   :  { %237 = vrot.lane.b32.xlu2 %v830_v18, %s727_s15  ;;  %219 = vrot.lane.b32.xlu1 %v930_v32, %s726_s9 }
  0x5c   :  { %239 = vrot.lane.b32.xlu0 %v825_v17, %s727_s15 }
  0x5e   :  { %243 = vrot.lane.b32.xlu2 %v851_v21, %s727_s15  ;;  %241 = vrot.lane.b32.xlu1 %v841_v19, %s727_s15 }
  0x60   :  { %v117_v33 = vpop.permute.xlu2 %116 }
  0x64   :  { %245 = vrot.lane.b32.xlu0 %v846_v20, %s727_s15 }
  0x66   :  { %249 = vrot.lane.b32.xlu2 %v872_v24, %s727_s15  ;;  %247 = vrot.lane.b32.xlu1 %v862_v22, %s727_s15 }
  0x68   :  { %v119_v35 = vpop.permute.xlu2 %118 }
  0x69   :  { %v151_v36 = vsel %vm2320_vm0, %v117_v33, %v119_v35 }
  0x6a   :  { %vm954_vm1 = vcmp.eq.s32.totalorder %v151_v36, %v162_v34  ;;  %v2408_v36 = vmov 0 }
  0x6b   :  { %v2397_v37 = vsel %vm954_vm1, 4294967295, %v2396_v37  ;;  %v2409_v36 = vsel %vm1039_vm5, 4294967295, %v2408_v36 }
  0x6c   :  { %2398 = vst [vmem:[#allocation18_spill] sm:$0xff] %v2397_v37  ;;  %251 = vrot.lane.b32.xlu0 %v867_v23, %s727_s15 }
  0x6d   :  { %2410 = vst [vmem:[#allocation22_spill] sm:$0xff] %v2409_v36 }
  0x6e   :  { %255 = vrot.lane.b32.xlu2 %v893_v27, %s727_s15  ;;  %253 = vrot.lane.b32.xlu1 %v883_v25, %s727_s15  ;;  %v71_v27 = vand.u32 3, %v793_v11 }
  0x70   :  { %v964_v38 = vpop.permute.xlu2 %124  ;;  %vm1168_vm12 = vcmp.lt.s32.totalorder %v71_v27, 2  ;;  %v72_v27 = vand.u32 3, %v805_v13 }
  0x72   :  { %vm1219_vm14 = vcmp.lt.s32.totalorder %v72_v27, 2 }
  0x74   :  { %257 = vrot.lane.b32.xlu0 %v888_v26, %s727_s15 }
  0x76   :  { %v968_v39 = vpop.permute.xlu0 %108  ;;  %261 = vrot.lane.b32.xlu2 %v914_v30, %s727_s15  ;;  %259 = vrot.lane.b32.xlu1 %v904_v28, %s727_s15  ;;  %v1105_v28 = vmul.f32 %v371_v57, %v32_v56 }
  0x78   :  { %v977_v43 = vpop.permute.xlu2 %130  ;;  %v113_v44 = vpop.permute.xlu1 %112  ;;  %2424 = vst [vmem:[#allocation30_spill] sm:$0xff] %v1105_v28 }
  0x7c   :  { %263 = vrot.lane.b32.xlu0 %v909_v29, %s727_s15 }
  0x7e   :  { %v111_v52 = vpop.permute.xlu0 %110  ;;  %267 = vrot.lane.b32.xlu2 %v930_v32, %s727_s15  ;;  %265 = vrot.lane.b32.xlu1 %v925_v31, %s727_s15  ;;  %v2433_v32 = vmov 0 }
  0x7f   :  { %v1006_v53 = vsel %vm2320_vm0, %v111_v52, %v113_v44  ;;  %v1011_v54 = vsel %vm2320_vm0, %v968_v39, %v111_v52  ;;  %v31_v52 = vld [vmem:[%s2226_s1 + $0x20] sm:$0xff] }
  0x80   :  { %v1027_v61 = vpop.permute.xlu2 %136  ;;  %v115_v62 = vpop.permute.xlu1 %114  ;;  %v1103_v30 = vmul.f32 %v370_v55, %v31_v52  ;;  %v69_v55 = vand.u32 3, %v790_v10 }
  0x81   :  { %v1033_v0 = vsel %vm2320_vm0, %v115_v62, %v117_v33  ;;  %v1037_v34 = vsel %vm2320_vm0, %v113_v44, %v115_v62  ;;  %v30_v33 = vld [vmem:[%s2226_s1 + $0x18] sm:$0xff]  ;;  %v369_v44 = vsel %vm1039_vm5, 0.1, %v2232_v49  ;;  %v2420_v49 = vmov 0 }
  0x82   :  { %v1088_v62 = vmul.f32 %v369_v44, %v30_v33  ;;  %v2421_v49 = vsel %vm1099_vm8, 4294967295, %v2420_v49  ;;  %2423 = vst [vmem:[#allocation29_spill] sm:$0xff] %v1103_v30  ;;  %v2425_v33 = vmov 0  ;;  %v2428_v44 = vmov 0 }
  0x83   :  { %2422 = vst [vmem:[#allocation28_spill] sm:$0xff] %v2421_v49  ;;  %v2426_v33 = vsel %vm1107_vm9, 4294967295, %v2425_v33  ;;  %vm1160_vm11 = vcmp.lt.s32.totalorder %v69_v55, 2 }
  0x84   :  { %398 = vrot.lane.b32.xlu0 %v1029_v63, %s726_s9  ;;  %2419 = vst [vmem:[#allocation27_spill] sm:$0xff] %v1088_v62  ;;  %v2434_v32 = vsel %vm1160_vm11, 4294967295, %v2433_v32 }
  0x85   :  { %2427 = vst [vmem:[#allocation31_spill] sm:$0xff] %v2426_v33 }
  0x86   :  { %v121_v50 = vpop.permute.xlu0 %120  ;;  %400 = vrot.lane.b32.xlu1 %v1043_v40, %s726_s9  ;;  %402 = vrot.lane.b32.xlu2 %v1045_v5, %s726_s9  ;;  %2435 = vst [vmem:[#allocation34_spill] sm:$0xff] %v2434_v32  ;;  %v74_v32 = vand.u32 3, %v808_v14 }
  0x87   :  { %v1070_v51 = vsel %vm2320_vm0, %v119_v35, %v121_v50  ;;  %v67_v35 = vand.u32 3, %v781_v9 }
  0x88   :  { %v123_v59 = vpop.permute.xlu1 %122  ;;  %v1086_v60 = vpop.permute.xlu2 %191  ;;  %vm1227_vm15 = vcmp.lt.s32.totalorder %v74_v32, 2  ;;  %v75_v32 = vand.u32 3, %v820_v16 }
  0x89   :  { %v1093_v31 = vsel %vm2320_vm0, %v123_v59, %v964_v38  ;;  %v1097_v29 = vsel %vm2320_vm0, %v121_v50, %v123_v59  ;;  %vm1111_vm10 = vcmp.lt.s32.totalorder %v67_v35, 2  ;;  %v2431_v50 = vmov 0.2   ;;  %v35_v59 = vld [vmem:[%s2226_s1 + $0x40] sm:$0xff] }
  0x8a   :  { %v2429_v44 = vsel %vm1111_vm10, 4294967295, %v2428_v44  ;;  %v372_v52 = vsel %vm1099_vm8, 0.1, %v2431_v50  ;;  %v373_v35 = vsel %vm1111_vm10, 0.1, %v2431_v50 }
  0x8b   :  { %2430 = vst [vmem:[#allocation32_spill] sm:$0xff] %v2429_v44  ;;  %v374_v26 = vsel %vm1107_vm9, 0.1, %v2431_v50  ;;  %v1149_v24 = vmul.f32 %v372_v52, %v33_v48  ;;  %v1164_v21 = vmul.f32 %v373_v35, %v34_v58  ;;  %v2438_v48 = vmov 0  ;;  %v37_v58 = vld [vmem:[%s2226_s1 + $0x50] sm:$0xff] }
  0x8c   :  { %404 = vrot.lane.b32.xlu0 %v1088_v62, %s726_s9  ;;  %v1166_v19 = vmul.f32 %v374_v26, %v35_v59  ;;  %v2439_v48 = vsel %vm1168_vm12, 4294967295, %v2438_v48  ;;  %v2441_v52 = vmov 0  ;;  %v375_v26 = vsel %vm1160_vm11, 0.1, %v2431_v50  ;;  %v38_v59 = vld [vmem:[%s2226_s1 + $0x58] sm:$0xff] }
  0x8d   :  { %2432 = vst [vmem:[#allocation33_spill] sm:$0xff] %v1149_v24  ;;  %v378_v27 = vsel %vm1219_vm14, 0.1, %v2431_v50 }
  0x8e   :  { %v127_v56 = vpop.permute.xlu0 %126  ;;  %406 = vrot.lane.b32.xlu1 %v1103_v30, %s726_s9  ;;  %408 = vrot.lane.b32.xlu2 %v1105_v28, %s726_s9  ;;  %2436 = vst [vmem:[#allocation35_spill] sm:$0xff] %v1164_v21 }
  0x8f   :  { %v1131_v57 = vsel %vm2320_vm0, %v964_v38, %v127_v56  ;;  %v70_v38 = vand.u32 3, %v796_v12  ;;  %2437 = vst [vmem:[#allocation36_spill] sm:$0xff] %v1166_v19 }
  0x90   :  { %v129_v25 = vpop.permute.xlu1 %128  ;;  %v1147_v23 = vpop.permute.xlu2 %197  ;;  %2440 = vst [vmem:[#allocation37_spill] sm:$0xff] %v2439_v48  ;;  %v2445_v48 = vmov 0 }
  0x91   :  { %v1154_v22 = vsel %vm2320_vm0, %v129_v25, %v977_v43  ;;  %v1158_v20 = vsel %vm2320_vm0, %v127_v56, %v129_v25  ;;  %vm1172_vm13 = vcmp.lt.s32.totalorder %v70_v38, 2  ;;  %v36_v25 = vld [vmem:[%s2226_s1 + $0x48] sm:$0xff]  ;;  %v377_v38 = vsel %vm1168_vm12, 0.1, %v2431_v50 }
  0x92   :  { %v2442_v52 = vsel %vm1172_vm13, 4294967295, %v2441_v52  ;;  %v376_v35 = vsel %vm1172_vm13, 0.1, %v2431_v50  ;;  %v1208_v44 = vmul.f32 %v375_v26, %v36_v25  ;;  %v2446_v48 = vsel %vm1219_vm14, 4294967295, %v2445_v48 }
  0x93   :  { %2443 = vst [vmem:[#allocation38_spill] sm:$0xff] %v2442_v52  ;;  %v1223_v49 = vmul.f32 %v376_v35, %v37_v58  ;;  %v1225_v42 = vmul.f32 %v377_v38, %v38_v59  ;;  %v2450_v25 = vmov 0  ;;  %v2453_v26 = vmov 0  ;;  %v40_v59 = vld [vmem:[%s2226_s1 + $0x68] sm:$0xff] }
  0x94   :  { %410 = vrot.lane.b32.xlu0 %v1149_v24, %s726_s9  ;;  %2444 = vst [vmem:[#allocation39_spill] sm:$0xff] %v1208_v44  ;;  %v2451_v25 = vsel %vm1227_vm15, 4294967295, %v2450_v25  ;;  %vm1277_vm14 = vcmp.lt.s32.totalorder %v75_v32, 2 }
  0x95   :  { %2447 = vst [vmem:[#allocation40_spill] sm:$0xff] %v2446_v48 }
  0x96   :  { %v133_v55 = vpop.permute.xlu0 %132  ;;  %412 = vrot.lane.b32.xlu1 %v1164_v21, %s726_s9  ;;  %414 = vrot.lane.b32.xlu2 %v1166_v19, %s726_s9  ;;  %2448 = vst [vmem:[#allocation41_spill] sm:$0xff] %v1223_v49 }
  0x97   :  { %v1192_v56 = vsel %vm2320_vm0, %v977_v43, %v133_v55  ;;  %v73_v43 = vand.u32 3, %v811_v15  ;;  %2449 = vst [vmem:[#allocation42_spill] sm:$0xff] %v1225_v42  ;;  %v2547_v37 = vld [vmem:[#allocation37_spill] sm:$0xff] }
  0x98   :  { %v135_v17 = vpop.permute.xlu1 %134  ;;  %v204_v33 = vpop.permute.xlu2 %203  ;;  %2452 = vst [vmem:[#allocation43_spill] sm:$0xff] %v2451_v25 }
  0x99   :  { %v1213_v52 = vsel %vm2320_vm0, %v135_v17, %v1027_v61  ;;  %v1217_v18 = vsel %vm2320_vm0, %v133_v55, %v135_v17  ;;  %vm1231_vm12 = vcmp.lt.s32.totalorder %v73_v43, 2  ;;  %v39_v17 = vld [vmem:[%s2226_s1 + $0x60] sm:$0xff]  ;;  %v41_v43 = vld [vmem:[%s2226_s1 + $0x70] sm:$0xff] }
  0x9a   :  { %v2454_v26 = vsel %vm1231_vm12, 4294967295, %v2453_v26  ;;  %v379_v38 = vsel %vm1231_vm12, 0.1, %v2431_v50 }
  0x9b   :  { %2455 = vst [vmem:[#allocation44_spill] sm:$0xff] %v2454_v26  ;;  %v2457_v26 = vmov 0  ;;  %v1281_v36 = vmul.f32 %v379_v38, %v40_v59 }
  0x9c   :  { %416 = vrot.lane.b32.xlu0 %v1208_v44, %s726_s9  ;;  %v2458_v26 = vsel %vm1277_vm14, 4294967295, %v2457_v26 }
  0x9d   :  { %2459 = vst [vmem:[#allocation46_spill] sm:$0xff] %v2458_v26 }
  0x9e   :  { %v139_v55 = vpop.permute.xlu0 %138  ;;  %418 = vrot.lane.b32.xlu1 %v1223_v49, %s726_s9  ;;  %420 = vrot.lane.b32.xlu2 %v1225_v42, %s726_s9  ;;  %2460 = vst [vmem:[#allocation47_spill] sm:$0xff] %v1281_v36 }
  0x9f   :  { %v1251_v58 = vsel %vm2320_vm0, %v1027_v61, %v139_v55  ;;  %v1256_v35 = vsel %vm2320_vm0, %v139_v55, %v968_v39  ;;  %v380_v61 = vsel %vm1227_vm15, 0.1, %v2431_v50  ;;  %v1270_v39 = vmul.f32 %v378_v27, %v39_v17  ;;  %v42_v17 = vld [vmem:[%s2226_s1 + $0x78] sm:$0xff] }
  0xa0   :  { %v210_v48 = vpop.permute.xlu2 %209  ;;  %v190_v41 = vpop.permute.xlu1 %189  ;;  %v1283_v46 = vmul.f32 %v380_v61, %v41_v43  ;;  %v381_v27 = vsel %vm1277_vm14, 0.1, %v2431_v50  ;;  %vm2329_vm15 = vcmp.lt.s32.totalorder %v745_v1, 126 }
  0xa1   :  { %2456 = vst [vmem:[#allocation45_spill] sm:$0xff] %v1270_v39  ;;  %v1275_v55 = vsel %vm2320_vm0, %v190_v41, %v1086_v60  ;;  %v1300_v43 = vmul.f32 %v381_v27, %v42_v17 }
  0xa2   :  { %2461 = vst [vmem:[#allocation48_spill] sm:$0xff] %v1283_v46 }
  0xa3   :  { %2462 = vst [vmem:[#allocation49_spill] sm:$0xff] %v1300_v43 }
  0xa4   :  { %422 = vrot.lane.b32.xlu0 %v1270_v39, %s726_s9 }
  0xa6   :  { %v194_v25 = vpop.permute.xlu0 %193  ;;  %424 = vrot.lane.b32.xlu1 %v1281_v36, %s726_s9  ;;  %426 = vrot.lane.b32.xlu2 %v1283_v46, %s726_s9 }
  0xa7   :  { %v234_v32 = vsel %vm2320_vm0, %v1086_v60, %v194_v25 }
  0xa8   :  { %v216_v59 = vpop.permute.xlu2 %215  ;;  %v196_v38 = vpop.permute.xlu1 %195 }
  0xa9   :  { %v1305_v61 = vsel %vm2320_vm0, %v196_v38, %v1147_v23  ;;  %v1309_v50 = vsel %vm2320_vm0, %v194_v25, %v196_v38 }
  0xac   :  { %428 = vrot.lane.b32.xlu0 %v1300_v43, %s726_s9 }
  0xae   :  { %v200_v26 = vpop.permute.xlu0 %199  ;;  %446 = vrot.lane.b32.xlu1 %v1029_v63, %s727_s15  ;;  %448 = vrot.lane.b32.xlu2 %v1043_v40, %s727_s15 }
  0xaf   :  { %v1320_v60 = vsel %vm2320_vm0, %v1147_v23, %v200_v26 }
  0xb0   :  { %v1322_v17 = vpop.permute.xlu2 %237  ;;  %v202_v27 = vpop.permute.xlu1 %201 }
  0xb1   :  { %v1326_v25 = vsel %vm2320_vm0, %v202_v27, %v204_v33  ;;  %v1330_v38 = vsel %vm2320_vm0, %v200_v26, %v202_v27 }
  0xb4   :  { %450 = vrot.lane.b32.xlu0 %v1045_v5, %s727_s15 }
  0xb6   :  { %v206_v40 = vpop.permute.xlu0 %205  ;;  %452 = vrot.lane.b32.xlu1 %v1088_v62, %s727_s15  ;;  %454 = vrot.lane.b32.xlu2 %v1103_v30, %s727_s15 }
  0xb7   :  { %v1340_v23 = vsel %vm2320_vm0, %v204_v33, %v206_v40 }
  0xb8   :  { %v244_v63 = vpop.permute.xlu2 %243  ;;  %v208_v47 = vpop.permute.xlu1 %207 }
  0xb9   :  { %v1344_v26 = vsel %vm2320_vm0, %v208_v47, %v210_v48  ;;  %v1348_v27 = vsel %vm2320_vm0, %v206_v40, %v208_v47 }
  0xbc   :  { %456 = vrot.lane.b32.xlu0 %v1105_v28, %s727_s15 }
  0xbe   :  { %v212_v62 = vpop.permute.xlu0 %211  ;;  %458 = vrot.lane.b32.xlu1 %v1149_v24, %s727_s15  ;;  %460 = vrot.lane.b32.xlu2 %v1164_v21, %s727_s15 }
  0xbf   :  { %v1358_v33 = vsel %vm2320_vm0, %v210_v48, %v212_v62 }
  0xc0   :  { %v250_v30 = vpop.permute.xlu2 %249  ;;  %v214_v5 = vpop.permute.xlu1 %213 }
  0xc1   :  { %v1362_v47 = vsel %vm2320_vm0, %v214_v5, %v216_v59  ;;  %v1366_v40 = vsel %vm2320_vm0, %v212_v62, %v214_v5 }
  0xc4   :  { %462 = vrot.lane.b32.xlu0 %v1166_v19, %s727_s15  ;;  %v157_v19 = vxor.u32 2, %v745_v1 }
  0xc6   :  { %v218_v28 = vpop.permute.xlu0 %217  ;;  %464 = vrot.lane.b32.xlu1 %v1208_v44, %s727_s15  ;;  %466 = vrot.lane.b32.xlu2 %v1223_v49, %s727_s15  ;;  %v159_v49 = vxor.u32 2, %v753_v3 }
  0xc7   :  { %v1376_v48 = vsel %vm2320_vm0, %v216_v59, %v218_v28  ;;  %v158_v59 = vxor.u32 2, %v760_v4 }
  0xc8   :  { %v1378_v21 = vpop.permute.xlu2 %255  ;;  %v220_v24 = vpop.permute.xlu1 %219  ;;  %vm1412_vm13 = vcmp.eq.s32.totalorder %v1006_v53, %v159_v49  ;;  %v160_v49 = vxor.u32 2, %v766_v6  ;;  %v172_v53 = vxor.u32 2, %v820_v16 }
  0xc9   :  { %v221_v5 = vsel %vm2320_vm0, %v218_v28, %v220_v24  ;;  %v236_v62 = vsel %vm2320_vm0, %v220_v24, %v190_v41  ;;  %vm1395_vm0 = vcmp.eq.s32.totalorder %v1256_v35, %v157_v19  ;;  %v2463_v24 = vmov 0 }
  0xca   :  { %v2464_v24 = vsel %vm1395_vm0, 4294967295, %v2463_v24  ;;  %vm1407_vm12 = vcmp.eq.s32.totalorder %v1011_v54, %v158_v59  ;;  %v2467_v19 = vmov 0 }
  0xcb   :  { %v2468_v19 = vsel %vm1412_vm13, 4294967295, %v2467_v19 }
  0xcc   :  { %468 = vrot.lane.b32.xlu0 %v1225_v42, %s727_s15  ;;  %v2465_v42 = vmov 0 }
  0xcd   :  { %v2466_v42 = vsel %vm1407_vm12, 4294967295, %v2465_v42 }
  0xce   :  { %v240_v44 = vpop.permute.xlu0 %239  ;;  %470 = vrot.lane.b32.xlu1 %v1270_v39, %s727_s15  ;;  %472 = vrot.lane.b32.xlu2 %v1281_v36, %s727_s15 }
  0xcf   :  { %v284_v28 = vsel %vm2329_vm15, %v1322_v17, %v240_v44 }
  0xd0   :  { %v1404_v3 = vsel %vm1395_vm0, %v236_v62, %v284_v28  ;;  %v262_v4 = vpop.permute.xlu2 %261  ;;  %v242_v41 = vpop.permute.xlu1 %241  ;;  %v2472_v28 = vmov 0 }
  0xd1   :  { %v282_v35 = vsel %vm2329_vm15, %v242_v41, %v244_v63  ;;  %v283_v36 = vsel %vm2329_vm15, %v240_v44, %v242_v41  ;;  %v161_v44 = vxor.u32 2, %v750_v2  ;;  %vm1437_vm15 = vcmp.eq.s32.totalorder %v1037_v34, %v160_v49 }
  0xd2   :  { %v1423_v62 = vsel %vm1407_vm12, %v1275_v55, %v283_v36  ;;  %v1427_v54 = vsel %vm1412_vm13, %v234_v32, %v282_v35  ;;  %v2469_v36 = vmov 0  ;;  %vm2471_vm13 = vcmp.lt.s32.totalorder %v745_v1, 126 }
  0xd3   :  { %v2470_v36 = vsel %vm1437_vm15, 4294967295, %v2469_v36  ;;  %vm1449_vm12 = vcmp.eq.s32.totalorder %v1251_v58, %v172_v53  ;;  %vm2475_vm0 = vmmov %vm2471_vm13  ;;  %v2478_v41 = vmov 0  ;;  %v164_v35 = vxor.u32 2, %v781_v9 }
  0xd4   :  { %474 = vrot.lane.b32.xlu0 %v1283_v46, %s727_s15  ;;  %v2473_v28 = vsel %vm1449_vm12, 4294967295, %v2472_v28  ;;  %vm2476_vm11 = vmmov %vm2475_vm0  ;;  %v165_v49 = vxor.u32 2, %v778_v8  ;;  %v2484_v9 = vmov 0  ;;  %v2487_v8 = vmov 0 }
  0xd5   :  { %2474 = vst [vmem:[#allocation50_spill] sm:$0xff] %v2473_v28 }
  0xd6   :  { %v246_v59 = vpop.permute.xlu0 %245  ;;  %476 = vrot.lane.b32.xlu1 %v1300_v43, %s727_s15 }
  0xd7   :  { %v281_v55 = vsel %vm2471_vm13, %v244_v63, %v246_v59  ;;  %vm2477_vm13 = vmmov %vm2475_vm0 }
  0xd8   :  { %v1446_v6 = vsel %vm1437_vm15, %v1309_v50, %v281_v55  ;;  %v268_v16 = vpop.permute.xlu2 %267  ;;  %v248_v32 = vpop.permute.xlu1 %247  ;;  %vm1470_vm15 = vcmp.eq.s32.totalorder %v1033_v0, %v161_v44  ;;  %v168_v44 = vxor.u32 2, %v793_v11  ;;  %v2495_v11 = vmov 0 }
  0xd9   :  { %v285_v2 = vsel %vm2475_vm0, %v268_v16, %v1322_v17  ;;  %v279_v34 = vsel %vm2476_vm11, %v248_v32, %v250_v30  ;;  %v280_v50 = vsel %vm2477_vm13, %v246_v59, %v248_v32  ;;  %v2479_v41 = vsel %vm1470_vm15, 4294967295, %v2478_v41 }
  0xda   :  { %v1460_v63 = vsel %vm1449_vm12, %v221_v5, %v285_v2  ;;  %v1467_v58 = vsel %vm954_vm1, %v1320_v60, %v279_v34  ;;  %2480 = vst [vmem:[#allocation51_spill] sm:$0xff] %v2479_v41  ;;  %v163_v17 = vxor.u32 2, %v775_v7  ;;  %v1478_v5 = vsel %vm1470_vm15, %v1305_v61, %v280_v50  ;;  %vm2490_vm1 = vmmov %vm2476_vm11 }
  0xdb   :  { %v2481_v60 = vmov 0  ;;  %vm1495_vm13 = vcmp.eq.s32.totalorder %v1097_v29, %v164_v35  ;;  %vm1500_vm12 = vcmp.eq.s32.totalorder %v1093_v31, %v165_v49  ;;  %v166_v31 = vxor.u32 2, %v790_v10 }
  0xdc   :  { %vm1483_vm0 = vcmp.eq.s32.totalorder %v1070_v51, %v163_v17  ;;  %v2485_v9 = vsel %vm1495_vm13, 4294967295, %v2484_v9  ;;  %v2488_v8 = vsel %vm1500_vm12, 4294967295, %v2487_v8  ;;  %v167_v59 = vxor.u32 2, %v796_v12 }
  0xdd   :  { %v2482_v60 = vsel %vm1483_vm0, 4294967295, %v2481_v60  ;;  %2486 = vst [vmem:[#allocation53_spill] sm:$0xff] %v2485_v9  ;;  %v2492_v2 = vmov 0  ;;  %v170_v34 = vxor.u32 2, %v811_v15  ;;  %v171_v50 = vxor.u32 2, %v808_v14 }
  0xde   :  { %v252_v53 = vpop.permute.xlu0 %251  ;;  %2483 = vst [vmem:[#allocation52_spill] sm:$0xff] %v2482_v60  ;;  %v2503_v35 = vmov 0  ;;  %v2506_v14 = vmov 0  ;;  %v2509_v15 = vmov 0  ;;  %v2552_v60 = vld [vmem:[#allocation40_spill] sm:$0xff] }
  0xdf   :  { %v278_v0 = vsel %vm2476_vm11, %v250_v30, %v252_v53  ;;  %2489 = vst [vmem:[#allocation54_spill] sm:$0xff] %v2488_v8  ;;  %vm2491_vm11 = vmmov %vm2490_vm1 }
  0xe0   :  { %v1492_v7 = vsel %vm1483_vm0, %v1330_v38, %v278_v0  ;;  %v254_v61 = vpop.permute.xlu1 %253  ;;  %v1522_v32 = vpop.permute.xlu2 %402  ;;  %vm2501_vm0 = vmmov %vm2491_vm11 }
  0xe1   :  { %v276_v30 = vsel %vm2490_vm1, %v254_v61, %v1378_v21  ;;  %v277_v51 = vsel %vm2491_vm11, %v252_v53, %v254_v61  ;;  %vm1525_vm1 = vcmp.eq.s32.totalorder %v1131_v57, %v166_v31  ;;  %v2498_v57 = vmov 0 }
  0xe2   :  { %v1512_v38 = vsel %vm1495_vm13, %v1326_v25, %v277_v51  ;;  %v1517_v29 = vsel %vm1500_vm12, %v1340_v23, %v276_v30  ;;  %v2493_v2 = vsel %vm1525_vm1, 4294967295, %v2492_v2  ;;  %vm1538_vm12 = vcmp.eq.s32.totalorder %v1158_v20, %v167_v59 }
  0xe3   :  { %2494 = vst [vmem:[#allocation55_spill] sm:$0xff] %v2493_v2  ;;  %v2496_v11 = vsel %vm1538_vm12, 4294967295, %v2495_v11  ;;  %vm1543_vm13 = vcmp.eq.s32.totalorder %v1154_v22, %v168_v44  ;;  %v169_v22 = vxor.u32 2, %v805_v13  ;;  %v729_v31 = vmov -1.0  }
  0xe4   :  { %2497 = vst [vmem:[#allocation56_spill] sm:$0xff] %v2496_v11  ;;  %v2499_v57 = vsel %vm1543_vm13, 4294967295, %v2498_v57  ;;  %v93_v44 = vsel %vm987_vm4, 1.0, %v729_v31  ;;  %v97_v43 = vsel %vm1051_vm7, 1.0, %v729_v31  ;;  %v2535_v11 = vld [vmem:[#allocation3_spill] sm:$0xff]  ;;  %v99_v9 = vsel %vm1111_vm10, 1.0, %v729_v31 }
  0xe5   :  { %2500 = vst [vmem:[#allocation57_spill] sm:$0xff] %v2499_v57  ;;  %v1650_v39 = vmul.f32 0.5, %v97_v43  ;;  %v302_v2 = vadd.f32 %v1404_v3, %v2535_v11  ;;  %v100_v28 = vsel %vm1107_vm9, 1.0, %v729_v31  ;;  %v2545_v57 = vld [vmem:[#allocation38_spill] sm:$0xff] }
  0xe6   :  { %v258_v55 = vpop.permute.xlu0 %257 }
  0xe7   :  { %v275_v25 = vsel %vm2491_vm11, %v1378_v21, %v258_v55  ;;  %vm2502_vm11 = vmmov %vm2501_vm0  ;;  %2533 = vst [vmem:[#allocation72_spill] sm:$0xff] %v1650_v39 }
  0xe8   :  { %v1535_v10 = vsel %vm1525_vm1, %v1348_v27, %v275_v25  ;;  %v260_v12 = vpop.permute.xlu1 %259  ;;  %v1576_v13 = vpop.permute.xlu2 %408  ;;  %vm2512_vm1 = vmmov %vm2502_vm11 }
  0xe9   :  { %v273_v23 = vsel %vm2501_vm0, %v260_v12, %v262_v4  ;;  %v274_v21 = vsel %vm2502_vm11, %v258_v55, %v260_v12  ;;  %vm1565_vm0 = vcmp.eq.s32.totalorder %v1192_v56, %v169_v22  ;;  %v1630_v22 = vmul.f32 0.5, %v93_v44 }
  0xea   :  { %v1554_v27 = vsel %vm1538_vm12, %v1344_v26, %v274_v21  ;;  %v1559_v20 = vsel %vm1543_vm13, %v1358_v33, %v273_v23  ;;  %v2504_v35 = vsel %vm1565_vm0, 4294967295, %v2503_v35  ;;  %vm1579_vm13 = vcmp.eq.s32.totalorder %v1217_v18, %v170_v34 }
  0xeb   :  { %2505 = vst [vmem:[#allocation58_spill] sm:$0xff] %v2504_v35  ;;  %v2507_v14 = vsel %vm1579_vm13, 4294967295, %v2506_v14  ;;  %vm1584_vm12 = vcmp.eq.s32.totalorder %v1213_v52, %v171_v50  ;;  %v94_v21 = vsel %vm983_vm3, 1.0, %v729_v31  ;;  %v95_v50 = vsel %vm1039_vm5, 1.0, %v729_v31 }
  0xec   :  { %2508 = vst [vmem:[#allocation59_spill] sm:$0xff] %v2507_v14  ;;  %v2510_v15 = vsel %vm1584_vm12, 4294967295, %v2509_v15  ;;  %v98_v35 = vsel %vm1099_vm8, 1.0, %v729_v31 }
  0xed   :  { %2511 = vst [vmem:[#allocation60_spill] sm:$0xff] %v2510_v15  ;;  %v1646_v15 = vsel %vm1277_vm14, 1.0, %v729_v31  ;;  %v1656_v8 = vmul.f32 0.5, %v98_v35  ;;  %vm2548_vm14 = vnez %v2547_v37 }
  0xee   :  { %v264_v17 = vpop.permute.xlu0 %263  ;;  %2523 = vst [vmem:[#allocation19_spill] sm:$0xff] %v1630_v22  ;;  %v2542_v22 = vld [vmem:[#allocation4_spill] sm:$0xff] }
  0xef   :  { %v272_v26 = vsel %vm2502_vm11, %v262_v4, %v264_v17  ;;  %2531 = vst [vmem:[#allocation70_spill] sm:$0xff] %v1646_v15  ;;  %v336_v37 = vsub.f32 %v1427_v54, %v2542_v22 }
  0xf0   :  { %v1574_v33 = vsel %vm1565_vm0, %v1366_v40, %v272_v26  ;;  %v266_v49 = vpop.permute.xlu1 %265  ;;  %v1606_v0 = vpop.permute.xlu2 %414  ;;  %v1636_v26 = vmul.f32 0.5, %v95_v50  ;;  %2536 = vst [vmem:[#allocation3_spill] sm:$0xff] %v1656_v8  ;;  %v2543_v8 = vld [vmem:[#allocation34_spill] sm:$0xff]  ;;  %vm2586_vm0 = vnez %v2466_v42 }
  0xf1   :  { %v270_v56 = vsel %vm2502_vm11, %v266_v49, %v268_v16  ;;  %v271_v40 = vsel %vm2512_vm1, %v264_v17, %v266_v49  ;;  %2513 = vst [vmem:[#allocation61_spill] sm:$0xff] %v1606_v0  ;;  %v1634_v17 = vmul.f32 0.5, %v94_v21  ;;  %vm2544_vm1 = vnez %v2543_v8 }
  0xf2   :  { %v1595_v4 = vsel %vm1579_vm13, %v1362_v47, %v271_v40  ;;  %v1600_v18 = vsel %vm1584_vm12, %v1376_v48, %v270_v56  ;;  %v92_v48 = vsel %vm979_vm2, 1.0, %v729_v31  ;;  %2526 = vst [vmem:[#allocation68_spill] sm:$0xff] %v1636_v26  ;;  %v96_v56 = vsel %vm1047_vm6, 1.0, %v729_v31 }
  0xf3   :  { %v1626_v12 = vmul.f32 0.5, %v92_v48  ;;  %2525 = vst [vmem:[#allocation22_spill] sm:$0xff] %v1634_v17  ;;  %v1648_v14 = vmul.f32 0.5, %v96_v56  ;;  %v334_v17 = vsub.f32 %v1404_v3, %v2535_v11  ;;  %v304_v40 = vadd.f32 %v1427_v54, %v2542_v22  ;;  %v2562_v54 = vld [vmem:[#allocation6_spill] sm:$0xff] }
  0xf4   :  { %vm2546_vm11 = vnez %v2545_v57  ;;  %v1680_v3 = vsel %vm2548_vm14, 1.0, %v729_v31  ;;  %vm2553_vm12 = vnez %v2552_v60  ;;  %v1694_v49 = vmul.f32 0.5, %v302_v2  ;;  %v2556_v60 = vld [vmem:[#allocation44_spill] sm:$0xff]  ;;  %v2558_v2 = vld [vmem:[#allocation43_spill] sm:$0xff] }
  0xf5   :  { %2521 = vst [vmem:[#allocation67_spill] sm:$0xff] %v1626_v12  ;;  %v1676_v26 = vsel %vm2546_vm11, 1.0, %v729_v31  ;;  %v1692_v8 = vsel %vm2553_vm12, 1.0, %v729_v31  ;;  %vm2557_vm13 = vnez %v2556_v60  ;;  %vm2559_vm14 = vnez %v2558_v2 }
  0xf6   :  { %v1602_v52 = vpop.permute.xlu0 %398  ;;  %2532 = vst [vmem:[#allocation71_spill] sm:$0xff] %v1648_v14  ;;  %v2539_v14 = vld [vmem:[#allocation2_spill] sm:$0xff]  ;;  %v1715_v12 = vsel %vm2559_vm14, 1.0, %v729_v31  ;;  %v337_v22 = vsub.f32 %v1446_v6, %v2562_v54  ;;  %vm2576_vm14 = vcmp.lt.s32.totalorder %v745_v1, 2  ;;  %vm2578_vm12 = vnez %v2464_v24 }
  0xf7   :  { %v303_v39 = vadd.f32 %v1423_v62, %v2539_v14  ;;  %v335_v57 = vsub.f32 %v1423_v62, %v2539_v14  ;;  %2560 = vst [vmem:[#allocation78_spill] sm:$0xff] %v1715_v12  ;;  %v1717_v62 = vmul.f32 0.5, %v304_v40  ;;  %v305_v14 = vadd.f32 %v1446_v6, %v2562_v54  ;;  %v2566_v12 = vld [vmem:[#allocation7_spill] sm:$0xff] }
  0xf8   :  { %v1604_v53 = vpop.permute.xlu1 %400  ;;  %v1612_v30 = vpop.permute.xlu2 %420  ;;  %v307_v60 = vadd.f32 %v1467_v58, %v2566_v12  ;;  %v1739_v54 = vmul.f32 %v336_v37, %v94_v21 }
  0xf9   :  { %2515 = vst [vmem:[#allocation63_spill] sm:$0xff] %v1612_v30  ;;  %v1668_v30 = vmul.f32 0.5, %v100_v28  ;;  %v1737_v6 = vmul.f32 %v335_v57, %v93_v44  ;;  %v1753_v37 = vmul.f32 0.5, %v305_v14  ;;  %v1755_v57 = vmul.f32 %v337_v22, %v95_v50  ;;  %v2572_v50 = vld [vmem:[#allocation12_spill] sm:$0xff] }
  0xfa   :  { %2561 = vst [vmem:[#allocation79_spill] sm:$0xff] %v1717_v62  ;;  %v311_v14 = vadd.f32 %v1535_v10, %v2572_v50  ;;  %v343_v22 = vsub.f32 %v1535_v10, %v2572_v50 }
  0xfb   :  { %2541 = vst [vmem:[#allocation73_spill] sm:$0xff] %v1668_v30  ;;  %v1688_v30 = vmul.f32 0.5, %v1680_v3 }
  0xfd   :  { %2551 = vst [vmem:[#allocation75_spill] sm:$0xff] %v1688_v30  ;;  %v1707_v30 = vmul.f32 0.5, %v303_v39 }
  0xfe   :  { %v1608_v16 = vpop.permute.xlu0 %404 }
 0x100   :  { %v1610_v61 = vpop.permute.xlu1 %406  ;;  %v1624_v25 = vpop.permute.xlu2 %426 }
 0x101   :  { %2514 = vst [vmem:[#allocation62_spill] sm:$0xff] %v1610_v61 }
 0x102   :  { %2520 = vst [vmem:[#allocation66_spill] sm:$0xff] %v1624_v25  ;;  %v101_v25 = vsel %vm2544_vm1, 1.0, %v729_v31 }
 0x103   :  { %v1682_v11 = vmul.f32 0.5, %v101_v25 }
 0x105   :  { %2549 = vst [vmem:[#allocation4_spill] sm:$0xff] %v1682_v11  ;;  %v1701_v11 = vmul.f32 0.5, %v1692_v8 }
 0x106   :  { %v1614_v51 = vpop.permute.xlu0 %410 }
 0x107   :  { %2516 = vst [vmem:[#allocation64_spill] sm:$0xff] %v1614_v51  ;;  %v2569_v51 = vld [vmem:[#allocation10_spill] sm:$0xff] }
 0x108   :  { %v1616_v47 = vpop.permute.xlu1 %412  ;;  %2554 = vst [vmem:[#allocation76_spill] sm:$0xff] %v1701_v11  ;;  %v1727_v11 = vpop.permute.xlu2 %448  ;;  %v310_v61 = vadd.f32 %v1517_v29, %v2569_v51  ;;  %v342_v44 = vsub.f32 %v1517_v29, %v2569_v51 }
 0x109   :  { %2517 = vst [vmem:[#allocation65_spill] sm:$0xff] %v1616_v47  ;;  %v2567_v47 = vld [vmem:[#allocation9_spill] sm:$0xff] }
 0x10a   :  { %v308_v0 = vadd.f32 %v1492_v7, %v2567_v47 }
 0x10e   :  { %v1622_v55 = vpop.permute.xlu0 %416 }
 0x10f   :  { %2519 = vst [vmem:[#allocation20_spill] sm:$0xff] %v1622_v55  ;;  %v1711_v55 = vsel %vm2557_vm13, 1.0, %v729_v31  ;;  %v2565_v31 = vld [vmem:[#allocation5_spill] sm:$0xff]  ;;  %vm2577_vm13 = vcmp.lt.s32.totalorder %v745_v1, 126  ;;  %v2681_v1 = vld [vmem:[#allocation50_spill] sm:$0xff] }
 0x110   :  { %v1642_v46 = vpop.permute.xlu1 %418  ;;  %v306_v40 = vadd.f32 %v1478_v5, %v2565_v31 }
 0x111   :  { %2529 = vst [vmem:[#allocation69_spill] sm:$0xff] %v1642_v46  ;;  %v1666_v46 = vmul.f32 0.5, %v99_v9 }
 0x113   :  { %2540 = vst [vmem:[#allocation2_spill] sm:$0xff] %v1666_v46  ;;  %v1685_v46 = vmul.f32 0.5, %v1676_v26 }
 0x115   :  { %2550 = vst [vmem:[#allocation74_spill] sm:$0xff] %v1685_v46  ;;  %v1705_v46 = vmul.f32 %v334_v17, %v92_v48  ;;  %v2563_v48 = vld [vmem:[#allocation17_spill] sm:$0xff] }
 0x116   :  { %v1703_v41 = vpop.permute.xlu0 %422  ;;  %v317_v39 = vadd.f32 %v1460_v63, %v2563_v48  ;;  %v349_v2 = vsub.f32 %v1460_v63, %v2563_v48  ;;  %v340_v63 = vsub.f32 %v1492_v7, %v2567_v47  ;;  %v2568_v48 = vld [vmem:[#allocation8_spill] sm:$0xff]  ;;  %v1764_v47 = vmul.f32 0.5, %v306_v40 }
 0x117   :  { %2555 = vst [vmem:[#allocation77_spill] sm:$0xff] %v1703_v41  ;;  %v339_v41 = vsub.f32 %v1467_v58, %v2566_v12  ;;  %v309_v62 = vadd.f32 %v1512_v38, %v2568_v48  ;;  %v341_v58 = vsub.f32 %v1512_v38, %v2568_v48  ;;  %v1766_v12 = vmul.f32 0.5, %v307_v60 }
 0x118   :  { %v1725_v17 = vpop.permute.xlu1 %424  ;;  %v1762_v7 = vmul.f32 %v349_v2, %v1646_v15  ;;  %v1772_v38 = vmul.f32 0.5, %v308_v0  ;;  %v1780_v51 = vmul.f32 %v340_v63, %v98_v35  ;;  %v1784_v60 = vmul.f32 0.5, %v310_v61  ;;  %v2573_v0 = vld [vmem:[#allocation11_spill] sm:$0xff]  ;;  %v2581_v15 = vld [vmem:[#allocation21_spill] sm:$0xff] }
 0x119   :  { %2564 = vst [vmem:[#allocation6_spill] sm:$0xff] %v1725_v17  ;;  %v338_v17 = vsub.f32 %v1478_v5, %v2565_v31  ;;  %v1757_v5 = vmul.f32 0.5, %v317_v39  ;;  %v1768_v21 = vmul.f32 %v339_v41, %v97_v43  ;;  %v1782_v2 = vmul.f32 0.5, %v309_v62  ;;  %v2574_v39 = vld [vmem:[#allocation13_spill] sm:$0xff]  ;;  %v2575_v61 = vld [vmem:[#allocation15_spill] sm:$0xff] }
 0x11a   :  { %2571 = vst [vmem:[#allocation5_spill] sm:$0xff] %v1762_v7  ;;  %v1786_v43 = vmul.f32 %v341_v58, %v99_v9  ;;  %v1788_v41 = vmul.f32 %v342_v44, %v100_v28  ;;  %v344_v10 = vsub.f32 %v1554_v27, %v2573_v0  ;;  %v345_v35 = vsub.f32 %v1559_v20, %v2574_v39  ;;  %v455_v58 = vpop.permute.xlu2 %454  ;;  %v2579_v44 = vld [vmem:[#allocation14_spill] sm:$0xff] }
 0x11b   :  { %2570 = vst [vmem:[#allocation17_spill] sm:$0xff] %v1757_v5  ;;  %v1770_v31 = vmul.f32 %v338_v17, %v96_v56  ;;  %v312_v56 = vadd.f32 %v1554_v27, %v2573_v0  ;;  %v313_v17 = vadd.f32 %v1559_v20, %v2574_v39  ;;  %v314_v9 = vadd.f32 %v1574_v33, %v2575_v61  ;;  %v2580_v0 = vld [vmem:[#allocation16_spill] sm:$0xff] }
 0x11c   :  { %v1810_v63 = vmul.f32 0.5, %v311_v14  ;;  %v1812_v27 = vmul.f32 %v343_v22, %v101_v25  ;;  %v346_v20 = vsub.f32 %v1574_v33, %v2575_v61  ;;  %v315_v50 = vadd.f32 %v1595_v4, %v2579_v44 }
 0x11d   :  { %v316_v39 = vadd.f32 %v1600_v18, %v2580_v0  ;;  %v1828_v22 = vmul.f32 0.5, %v312_v56  ;;  %v347_v24 = vsub.f32 %v1595_v4, %v2579_v44  ;;  %v1839_v5 = vmul.f32 %v345_v35, %v1680_v3 }
 0x11e   :  { %v1778_v29 = vpop.permute.xlu0 %428  ;;  %v1841_v7 = vmul.f32 0.5, %v314_v9  ;;  %v1844_v45 = vmul.f32 %v346_v20, %v1692_v8  ;;  %v2587_v9 = vld [vmem:[#allocation23_spill] sm:$0xff] }
 0x11f   :  { %v445_v28 = vsel %vm2576_vm14, %v1778_v29, %v1602_v52  ;;  %v1861_v3 = vmul.f32 %v347_v24, %v1711_v55 }
 0x120   :  { %v1796_v40 = vpop.permute.xlu1 %446 }
 0x121   :  { %v492_v62 = vsel %vm2577_vm13, %v1796_v40, %v1727_v11 }
 0x122   :  { %v494_v48 = vsel %vm2578_vm12, %v445_v28, %v492_v62  ;;  %v1833_v28 = vmul.f32 0.5, %v313_v17  ;;  %v1836_v62 = vmul.f32 %v344_v10, %v1676_v26  ;;  %v1849_v17 = vmul.f32 0.5, %v315_v50  ;;  %vm2583_vm12 = vmmov %vm2577_vm13 }
 0x123   :  { %v510_v14 = vsel %vm979_vm2, %v2581_v15, %v494_v48  ;;  %v526_v25 = vsel %vm979_vm2, %v494_v48, %v2581_v15  ;;  %v348_v15 = vsub.f32 %v1600_v18, %v2580_v0  ;;  %v1851_v48 = vmul.f32 0.5, %v316_v39  ;;  %vm2582_vm2 = vmmov %vm2576_vm14  ;;  %v2684_v18 = vld [vmem:[#allocation48_spill] sm:$0xff]  ;;  %v2685_v0 = vld [vmem:[#allocation43_spill] sm:$0xff] }
 0x124   :  { %v542_v33 = vmul.f32 %v510_v14, %v1705_v46  ;;  %v574_v61 = vmul.f32 1.442695, %v526_v25  ;;  %v444_v26 = vsel %vm2582_vm2, %v1602_v52, %v1604_v53  ;;  %vm2584_vm14 = vmmov %vm2582_vm2  ;;  %v2592_v14 = vld [vmem:[#allocation24_spill] sm:$0xff]  ;;  %v2593_v25 = vld [vmem:[#allocation27_spill] sm:$0xff] }
 0x125   :  { %vm2585_vm13 = vmmov %vm2582_vm2 }
 0x126   :  { %v558_v4 = vadd.f32 %v542_v33, %v1694_v49  ;;  %694 = vpow2.f32 %v574_v61  ;;  %v451_v56 = vpop.permute.xlu0 %450  ;;  %v443_v49 = vsel %vm2584_vm14, %v1604_v53, %v1522_v32  ;;  %v442_v10 = vsel %vm2585_vm13, %v1522_v32, %v1608_v16  ;;  %vm2588_vm2 = vmmov %vm2583_vm12 }
 0x127   :  { %v491_v8 = vsel %vm2583_vm12, %v1727_v11, %v451_v56  ;;  %vm2589_vm12 = vmmov %vm2588_vm2  ;;  %vm2591_vm14 = vnez %v2470_v36 }
 0x128   :  { %v495_v52 = vsel %vm2586_vm0, %v444_v26, %v491_v8  ;;  %v453_v35 = vpop.permute.xlu1 %452  ;;  %vm2590_vm0 = vnez %v2468_v19  ;;  %v461_v8 = vpop.permute.xlu2 %460 }
 0x129   :  { %v511_v11 = vsel %vm987_vm4, %v2587_v9, %v495_v52  ;;  %v527_v20 = vsel %vm987_vm4, %v495_v52, %v2587_v9  ;;  %v489_v53 = vsel %vm2588_vm2, %v453_v35, %v455_v58  ;;  %v490_v44 = vsel %vm2589_vm12, %v451_v56, %v453_v35  ;;  %vm2595_vm4 = vmmov %vm2585_vm13  ;;  %v2597_v35 = vld [vmem:[#allocation64_spill] sm:$0xff] }
 0x12a   :  { %v543_v32 = vmul.f32 %v511_v11, %v1737_v6  ;;  %v576_v50 = vmul.f32 1.442695, %v527_v20  ;;  %v496_v42 = vsel %vm2590_vm0, %v443_v49, %v490_v44  ;;  %v497_v39 = vsel %vm2591_vm14, %v442_v10, %v489_v53  ;;  %v2594_v49 = vld [vmem:[#allocation62_spill] sm:$0xff]  ;;  %v2599_v11 = vld [vmem:[#allocation79_spill] sm:$0xff]  ;;  %vm2610_vm14 = vmmov %vm2588_vm2 }
 0x12b   :  { %v512_v59 = vsel %vm983_vm3, %v2592_v14, %v496_v42  ;;  %v513_v24 = vsel %vm1039_vm5, %v2593_v25, %v497_v39  ;;  %v528_v33 = vsel %vm983_vm3, %v496_v42, %v2592_v14  ;;  %v529_v19 = vsel %vm1039_vm5, %v497_v39, %v2593_v25  ;;  %vm2596_vm3 = vmmov %vm2595_vm4  ;;  %v2603_v42 = vld [vmem:[#allocation67_spill] sm:$0xff] }
 0x12c   :  { %v695_v61 = vpop.eup %694  ;;  %v1901_v36 = vadd.f32 %v543_v32, %v1707_v30  ;;  %696 = vpow2.f32 %v576_v50  ;;  %v544_v56 = vmul.f32 %v512_v59, %v1739_v54  ;;  %v545_v26 = vmul.f32 %v513_v24, %v1755_v57  ;;  %vm2598_vm5 = vmmov %vm2596_vm3  ;;  %v2601_v32 = vld [vmem:[#allocation65_spill] sm:$0xff] }
 0x12d   :  { %v440_v23 = vsel %vm2595_vm4, %v2594_v49, %v1576_v13  ;;  %v606_v10 = vmul.f32 %v695_v61, %v1705_v46  ;;  %v578_v52 = vmul.f32 1.442695, %v528_v33  ;;  %v580_v34 = vmul.f32 1.442695, %v529_v19  ;;  %v2600_v46 = vld [vmem:[#allocation61_spill] sm:$0xff]  ;;  %vm2602_vm13 = vmmov %vm2596_vm3 }
 0x12e   :  { %v441_v30 = vsel %vm2596_vm3, %v1608_v16, %v2594_v49  ;;  %v439_v9 = vsel %vm2598_vm5, %v1576_v13, %v2597_v35  ;;  %v1919_v20 = vadd.f32 %v544_v56, %v2599_v11  ;;  %v1922_v53 = vadd.f32 %v545_v26, %v1753_v37  ;;  %v457_v44 = vpop.permute.xlu0 %456  ;;  %vm2604_vm12 = vmmov %vm2596_vm3  ;;  %v2605_v37 = vld [vmem:[#allocation20_spill] sm:$0xff]  ;;  %v2608_v19 = vld [vmem:[#allocation29_spill] sm:$0xff] }
 0x12f   :  { %v1928_v50 = vsel %vm2602_vm13, %v2601_v32, %v2600_v46  ;;  %v638_v16 = vmul.f32 %v2603_v42, %v606_v10  ;;  %698 = vpow2.f32 %v578_v52  ;;  %v488_v39 = vsel %vm2588_vm2, %v455_v58, %v457_v44  ;;  %vm2606_vm0 = vmmov %vm2596_vm3  ;;  %v2614_v11 = vld [vmem:[#allocation18_spill] sm:$0xff]  ;;  %v2625_v42 = vld [vmem:[#allocation77_spill] sm:$0xff] }
 0x130   :  { %v438_v13 = vsel %vm2604_vm12, %v2597_v35, %v2601_v32  ;;  %v1941_v14 = vsel %vm2606_vm0, %v2600_v46, %v2605_v37  ;;  %700 = vpow2.f32 %v580_v34  ;;  %v498_v25 = vsel %vm1470_vm15, %v441_v30, %v488_v39  ;;  %v459_v24 = vpop.permute.xlu1 %458  ;;  %vm2611_vm4 = vmmov %vm2588_vm2  ;;  %v2612_v30 = vld [vmem:[#allocation52_spill] sm:$0xff]  ;;  %v2616_v32 = vld [vmem:[#allocation33_spill] sm:$0xff] }
 0x131   :  { %v654_v33 = vsub.f32 %v558_v4, %v638_v16  ;;  %v514_v58 = vsel %vm1047_vm6, %v2608_v19, %v498_v25  ;;  %v530_v56 = vsel %vm1047_vm6, %v498_v25, %v2608_v19  ;;  %v486_v26 = vsel %vm2610_vm14, %v459_v24, %v461_v8  ;;  %vm2624_vm3 = vmmov %vm2606_vm0 }
 0x132   :  { %v697_v49 = vpop.eup %696  ;;  %v546_v10 = vmul.f32 %v514_v58, %v1770_v31  ;;  %v582_v52 = vmul.f32 1.442695, %v530_v56  ;;  %v487_v34 = vsel %vm2611_vm4, %v457_v44, %v459_v24  ;;  %vm2613_vm15 = vnez %v2612_v30  ;;  %v2620_v24 = vld [vmem:[#allocation19_spill] sm:$0xff]  ;;  %vm2628_vm5 = vmmov %vm2588_vm2 }
 0x133   :  { %v500_v4 = vsel %vm2613_vm15, %v439_v9, %v486_v26  ;;  %670 = vst [vmem:[%s2227_s2] sm:$0xff] %v654_v33  ;;  %v607_v35 = vmul.f32 %v697_v49, %v1737_v6  ;;  %vm2615_vm6 = vnez %v2614_v11  ;;  %v2618_v9 = vld [vmem:[#allocation30_spill] sm:$0xff]  ;;  %v2622_v26 = vld [vmem:[#allocation69_spill] sm:$0xff]  ;;  %vm2634_vm12 = vmmov %vm2588_vm2 }
 0x134   :  { %v499_v46 = vsel %vm2615_vm6, %v440_v23, %v487_v34  ;;  %v516_v16 = vsel %vm1099_vm8, %v2616_v32, %v500_v4  ;;  %v532_v44 = vsel %vm1099_vm8, %v500_v4, %v2616_v32  ;;  %v1971_v39 = vadd.f32 %v546_v10, %v1764_v47  ;;  %v2621_v47 = vld [vmem:[#allocation63_spill] sm:$0xff]  ;;  %vm2623_vm8 = vmmov %vm2606_vm0  ;;  %v467_v4 = vpop.permute.xlu2 %466 }
 0x135   :  { %702 = vpow2.f32 %v582_v52  ;;  %v515_v25 = vsel %vm1051_vm7, %v2618_v9, %v499_v46  ;;  %v531_v6 = vsel %vm1051_vm7, %v499_v46, %v2618_v9  ;;  %v699_v23 = vpop.eup %698  ;;  %v639_v33 = vmul.f32 %v2620_v24, %v607_v35  ;;  %vm2626_vm7 = vmmov %vm2606_vm0 }
 0x136   :  { %v547_v19 = vmul.f32 %v515_v25, %v1768_v21  ;;  %v548_v61 = vmul.f32 %v516_v16, %v1780_v51  ;;  %v584_v58 = vmul.f32 1.442695, %v531_v6  ;;  %v701_v56 = vpop.eup %700  ;;  %v1986_v49 = vsel %vm2623_vm8, %v2622_v26, %v2621_v47  ;;  %v463_v30 = vpop.permute.xlu0 %462  ;;  %vm2654_vm15 = vmmov %vm2588_vm2 }
 0x137   :  { %v435_v10 = vsel %vm2624_vm3, %v2605_v37, %v2622_v26  ;;  %v608_v52 = vmul.f32 %v699_v23, %v1739_v54  ;;  %v586_v34 = vmul.f32 1.442695, %v532_v44  ;;  %v655_v35 = vsub.f32 %v1901_v36, %v639_v33  ;;  %v2627_v54 = vld [vmem:[#allocation22_spill] sm:$0xff]  ;;  %v2632_v23 = vld [vmem:[#allocation35_spill] sm:$0xff]  ;;  %vm2655_vm6 = vmmov %vm2588_vm2 }
 0x138   :  { %v609_v11 = vmul.f32 %v701_v56, %v1755_v57  ;;  %v1996_v46 = vadd.f32 %v547_v19, %v1766_v12  ;;  %v1999_v32 = vadd.f32 %v548_v61, %v1772_v38  ;;  %v2005_v37 = vsel %vm2626_vm7, %v2621_v47, %v2625_v42  ;;  %v465_v44 = vpop.permute.xlu1 %464  ;;  %v2629_v57 = vld [vmem:[#allocation68_spill] sm:$0xff]  ;;  %v2630_v38 = vld [vmem:[#allocation53_spill] sm:$0xff]  ;;  %v2635_v47 = vld [vmem:[#allocation66_spill] sm:$0xff] }
 0x139   :  { %v640_v16 = vmul.f32 %v2627_v54, %v608_v52  ;;  %704 = vpow2.f32 %v584_v58  ;;  %v485_v36 = vsel %vm2628_vm5, %v461_v8, %v463_v30  ;;  %671 = vst [vmem:[%s2227_s2 + $0x8] sm:$0xff] %v655_v35  ;;  %vm2631_vm13 = vnez %v2630_v38  ;;  %v2642_v35 = vld [vmem:[#allocation71_spill] sm:$0xff]  ;;  %v2643_v54 = vld [vmem:[#allocation36_spill] sm:$0xff]  ;;  %vm2667_vm5 = vmmov %vm2606_vm0 }
 0x13a   :  { %v641_v12 = vmul.f32 %v2629_v57, %v609_v11  ;;  %706 = vpow2.f32 %v586_v34  ;;  %v501_v9 = vsel %vm2631_vm13, %v438_v13, %v485_v36  ;;  %v483_v59 = vsel %vm2588_vm2, %v465_v44, %v467_v4  ;;  %v2640_v34 = vld [vmem:[#allocation55_spill] sm:$0xff]  ;;  %vm2668_vm13 = vmmov %vm2588_vm2 }
 0x13b   :  { %v703_v25 = vpop.eup %702  ;;  %v656_v6 = vsub.f32 %v1919_v20, %v640_v16  ;;  %v517_v8 = vsel %vm1111_vm10, %v2632_v23, %v501_v9  ;;  %v533_v33 = vsel %vm1111_vm10, %v501_v9, %v2632_v23  ;;  %v484_v19 = vsel %vm2634_vm12, %v463_v30, %v465_v44  ;;  %v2636_v20 = vld [vmem:[#allocation6_spill] sm:$0xff]  ;;  %vm2637_vm10 = vmmov %vm2606_vm0 }
 0x13c   :  { %v657_v61 = vsub.f32 %v1922_v53, %v641_v12  ;;  %v610_v13 = vmul.f32 %v703_v25, %v1770_v31  ;;  %v549_v58 = vmul.f32 %v517_v8, %v1786_v43  ;;  %v588_v56 = vmul.f32 1.442695, %v533_v33  ;;  %v2638_v31 = vld [vmem:[#allocation54_spill] sm:$0xff]  ;;  %vm2672_vm12 = vmmov %vm2655_vm6 }
 0x13d   :  { %v2034_v26 = vsel %vm2606_vm0, %v2636_v20, %v2635_v47  ;;  %v2040_v52 = vsel %vm2637_vm10, %v2625_v42, %v2636_v20  ;;  %672 = vst [vmem:[%s2227_s2 + $0x10] sm:$0xff] %v656_v6  ;;  %vm2639_vm14 = vnez %v2638_v31  ;;  %vm2641_vm4 = vnez %v2640_v34  ;;  %v2651_v20 = vld [vmem:[#allocation3_spill] sm:$0xff]  ;;  %vm2677_vm10 = vmmov %vm2655_vm6 }
 0x13e   :  { %v502_v53 = vsel %vm2639_vm14, %v1928_v50, %v484_v19  ;;  %v503_v30 = vsel %vm2641_vm4, %v1941_v14, %v483_v59  ;;  %673 = vst [vmem:[%s2227_s2 + $0x18] sm:$0xff] %v657_v61  ;;  %v642_v11 = vmul.f32 %v2642_v35, %v610_v13  ;;  %v2056_v42 = vadd.f32 %v549_v58, %v1782_v2  ;;  %v2645_v50 = vld [vmem:[#allocation39_spill] sm:$0xff]  ;;  %v469_v9 = vpop.permute.xlu0 %468  ;;  %v473_v13 = vpop.permute.xlu2 %472 }
 0x13f   :  { %708 = vpow2.f32 %v588_v56  ;;  %v518_v36 = vsel %vm1107_vm9, %v2643_v54, %v502_v53  ;;  %v705_v44 = vpop.eup %704  ;;  %v519_v12 = vsel %vm2544_vm1, %v2645_v50, %v503_v30  ;;  %v534_v14 = vsel %vm1107_vm9, %v502_v53, %v2643_v54  ;;  %vm2647_vm9 = vmmov %vm2588_vm2  ;;  %v2652_v53 = vld [vmem:[#allocation41_spill] sm:$0xff] }
 0x140   :  { %v535_v38 = vsel %vm2544_vm1, %v503_v30, %v2645_v50  ;;  %v550_v2 = vmul.f32 %v518_v36, %v1788_v41  ;;  %v707_v59 = vpop.eup %706  ;;  %v658_v25 = vsub.f32 %v1971_v39, %v642_v11  ;;  %v611_v6 = vmul.f32 %v705_v44, %v1768_v21  ;;  %v471_v58 = vpop.permute.xlu1 %470  ;;  %v2648_v39 = vld [vmem:[#allocation72_spill] sm:$0xff]  ;;  %v2656_v50 = vld [vmem:[#allocation58_spill] sm:$0xff] }
 0x141   :  { %v551_v23 = vmul.f32 %v519_v12, %v1812_v27  ;;  %v590_v24 = vmul.f32 1.442695, %v534_v14  ;;  %v612_v8 = vmul.f32 %v707_v59, %v1780_v51  ;;  %v592_v19 = vmul.f32 1.442695, %v535_v38  ;;  %v2649_v51 = vld [vmem:[#allocation56_spill] sm:$0xff]  ;;  %v2658_v12 = vld [vmem:[#allocation57_spill] sm:$0xff] }
 0x142   :  { %v2076_v33 = vadd.f32 %v550_v2, %v1784_v60  ;;  %v482_v61 = vsel %vm2647_vm9, %v467_v4, %v469_v9  ;;  %674 = vst [vmem:[%s2227_s2 + $0x20] sm:$0xff] %v658_v25  ;;  %v643_v21 = vmul.f32 %v2648_v39, %v611_v6  ;;  %vm2650_vm1 = vnez %v2649_v51  ;;  %v2660_v14 = vld [vmem:[#allocation45_spill] sm:$0xff] }
 0x143   :  { %v2085_v56 = vadd.f32 %v551_v23, %v1810_v63  ;;  %710 = vpow2.f32 %v590_v24  ;;  %v504_v60 = vsel %vm2650_vm1, %v435_v10, %v482_v61  ;;  %v644_v31 = vmul.f32 %v2651_v20, %v612_v8  ;;  %v2665_v59 = vld [vmem:[#allocation37_spill] sm:$0xff] }
 0x144   :  { %712 = vpow2.f32 %v592_v19  ;;  %v520_v34 = vsel %vm2546_vm11, %v2652_v53, %v504_v60  ;;  %v536_v30 = vsel %vm2546_vm11, %v504_v60, %v2652_v53  ;;  %v659_v11 = vsub.f32 %v1996_v46, %v643_v21 }
 0x145   :  { %v709_v35 = vpop.eup %708  ;;  %v552_v63 = vmul.f32 %v520_v34, %v1836_v62  ;;  %v594_v54 = vmul.f32 1.442695, %v536_v30  ;;  %v480_v10 = vsel %vm2654_vm15, %v471_v58, %v473_v13  ;;  %v660_v16 = vsub.f32 %v1999_v32, %v644_v31  ;;  %v2673_v34 = vld [vmem:[#allocation4_spill] sm:$0xff]  ;;  %v2674_v30 = vld [vmem:[#allocation47_spill] sm:$0xff] }
 0x146   :  { %v613_v36 = vmul.f32 %v709_v35, %v1786_v43  ;;  %v481_v44 = vsel %vm2655_vm6, %v469_v9, %v471_v58  ;;  %vm2657_vm8 = vnez %v2656_v50  ;;  %675 = vst [vmem:[%s2227_s2 + $0x28] sm:$0xff] %v659_v11  ;;  %vm2659_vm11 = vnez %v2658_v12  ;;  %v2661_v43 = vld [vmem:[#allocation40_spill] sm:$0xff]  ;;  %v2664_v9 = vld [vmem:[#allocation42_spill] sm:$0xff]  ;;  %v475_v6 = vpop.permute.xlu0 %474 }
 0x147   :  { %v506_v57 = vsel %vm2657_vm8, %v2005_v37, %v480_v10  ;;  %v568_v46 = vadd.f32 %v552_v63, %v1828_v22  ;;  %714 = vpow2.f32 %v594_v54  ;;  %v505_v32 = vsel %vm2659_vm11, %v1986_v49, %v481_v44  ;;  %676 = vst [vmem:[%s2227_s2 + $0x30] sm:$0xff] %v660_v16  ;;  %v2663_v37 = vld [vmem:[#allocation2_spill] sm:$0xff] }
 0x148   :  { %vm2662_vm3 = vnez %v2661_v43  ;;  %v645_v2 = vmul.f32 %v2663_v37, %v613_v36  ;;  %vm2666_vm7 = vnez %v2665_v59  ;;  %v430_v39 = vsel %vm2667_vm5, %v2635_v47, %v1778_v29  ;;  %v477_v20 = vpop.permute.xlu1 %476  ;;  %v2669_v29 = vld [vmem:[#allocation73_spill] sm:$0xff]  ;;  %v2678_v36 = vld [vmem:[#allocation78_spill] sm:$0xff] }
 0x149   :  { %v522_v38 = vsel %vm2662_vm3, %v2660_v14, %v506_v57  ;;  %v521_v25 = vsel %vm2666_vm7, %v2664_v9, %v505_v32  ;;  %v537_v22 = vsel %vm2666_vm7, %v505_v32, %v2664_v9  ;;  %v538_v49 = vsel %vm2662_vm3, %v506_v57, %v2660_v14  ;;  %v711_v23 = vpop.eup %710  ;;  %v2679_v57 = vld [vmem:[#allocation60_spill] sm:$0xff]  ;;  %v2688_v14 = vld [vmem:[#allocation46_spill] sm:$0xff] }
 0x14a   :  { %v553_v24 = vmul.f32 %v521_v25, %v1839_v5  ;;  %v554_v8 = vmul.f32 %v522_v38, %v1844_v45  ;;  %v596_v19 = vmul.f32 1.442695, %v537_v22  ;;  %v598_v61 = vmul.f32 1.442695, %v538_v49  ;;  %v713_v58 = vpop.eup %712  ;;  %v2690_v25 = vld [vmem:[#allocation5_spill] sm:$0xff] }
 0x14b   :  { %v661_v21 = vsub.f32 %v2056_v42, %v645_v2  ;;  %v614_v51 = vmul.f32 %v711_v23, %v1788_v41  ;;  %v479_v60 = vsel %vm2668_vm13, %v473_v13, %v475_v6  ;;  %v615_v31 = vmul.f32 %v713_v58, %v1812_v27  ;;  %v2670_v41 = vld [vmem:[#allocation59_spill] sm:$0xff] }
 0x14c   :  { %v569_v53 = vadd.f32 %v553_v24, %v1833_v28  ;;  %v570_v4 = vadd.f32 %v554_v8, %v1841_v7  ;;  %716 = vpow2.f32 %v596_v19  ;;  %vm2671_vm2 = vnez %v2670_v41  ;;  %v2675_v7 = vld [vmem:[#allocation44_spill] sm:$0xff]  ;;  %v2691_v8 = vld [vmem:[#allocation75_spill] sm:$0xff] }
 0x14d   :  { %677 = vst [vmem:[%s2227_s2 + $0x38] sm:$0xff] %v661_v21  ;;  %v646_v47 = vmul.f32 %v2669_v29, %v614_v51  ;;  %718 = vpow2.f32 %v598_v61  ;;  %v507_v42 = vsel %vm2671_vm2, %v2040_v52, %v479_v60  ;;  %v478_v13 = vsel %vm2672_vm12, %v475_v6, %v477_v20  ;;  %v715_v27 = vpop.eup %714  ;;  %v2692_v61 = vld [vmem:[#allocation17_spill] sm:$0xff] }
 0x14e   :  { %v647_v28 = vmul.f32 %v2673_v34, %v615_v31  ;;  %vm2676_vm0 = vnez %v2675_v7  ;;  %v493_v63 = vsel %vm2677_vm10, %v477_v20, %v1796_v40  ;;  %v616_v54 = vmul.f32 %v715_v27, %v1836_v62  ;;  %v2683_v62 = vld [vmem:[#allocation74_spill] sm:$0xff] }
 0x14f   :  { %v523_v35 = vsel %vm2676_vm0, %v2674_v30, %v507_v42  ;;  %v539_v11 = vsel %vm2676_vm0, %v507_v42, %v2674_v30  ;;  %v662_v52 = vsub.f32 %v2076_v33, %v646_v47  ;;  %v364_v44 = vmul.f32 %v348_v15, %v2678_v36  ;;  %v2694_v31 = vld [vmem:[#allocation70_spill] sm:$0xff] }
 0x150   :  { %v555_v10 = vmul.f32 %v523_v35, %v1861_v3  ;;  %v600_v16 = vmul.f32 1.442695, %v539_v11  ;;  %v663_v50 = vsub.f32 %v2085_v56, %v647_v28  ;;  %vm2680_vm14 = vnez %v2679_v57 }
 0x151   :  { %v508_v12 = vsel %vm2680_vm14, %v2034_v26, %v478_v13  ;;  %vm2682_vm4 = vnez %v2681_v1  ;;  %678 = vst [vmem:[%s2227_s2 + $0x40] sm:$0xff] %v662_v52  ;;  %v648_v33 = vmul.f32 %v2683_v62, %v616_v54  ;;  %vm2686_vm9 = vnez %v2685_v0  ;;  %v2687_v26 = vld [vmem:[#allocation49_spill] sm:$0xff] }
 0x152   :  { %v509_v40 = vsel %vm2682_vm4, %v430_v39, %v493_v63  ;;  %v571_v32 = vadd.f32 %v555_v10, %v1849_v17  ;;  %720 = vpow2.f32 %v600_v16  ;;  %v524_v15 = vsel %vm2686_vm9, %v2684_v18, %v508_v12  ;;  %v717_v56 = vpop.eup %716  ;;  %679 = vst [vmem:[%s2227_s2 + $0x48] sm:$0xff] %v663_v50 }
 0x153   :  { %vm2689_vm1 = vnez %v2688_v14  ;;  %v540_v38 = vsel %vm2686_vm9, %v508_v12, %v2684_v18  ;;  %v556_v37 = vmul.f32 %v524_v15, %v364_v44  ;;  %v719_v2 = vpop.eup %718  ;;  %v664_v9 = vsub.f32 %v568_v46, %v648_v33 }
 0x154   :  { %v525_v43 = vsel %vm2689_vm1, %v2687_v26, %v509_v40  ;;  %v541_v17 = vsel %vm2689_vm1, %v509_v40, %v2687_v26  ;;  %v617_v59 = vmul.f32 %v717_v56, %v1839_v5  ;;  %v602_v49 = vmul.f32 1.442695, %v540_v38  ;;  %v2693_v5 = vld [vmem:[#allocation76_spill] sm:$0xff] }
 0x155   :  { %v557_v22 = vmul.f32 %v525_v43, %v2690_v25  ;;  %v618_v6 = vmul.f32 %v719_v2, %v1844_v45  ;;  %v572_v23 = vadd.f32 %v556_v37, %v1851_v48  ;;  %v604_v24 = vmul.f32 1.442695, %v541_v17  ;;  %680 = vst [vmem:[%s2227_s2 + $0x50] sm:$0xff] %v664_v9 }
 0x156   :  { %v649_v19 = vmul.f32 %v2691_v8, %v617_v59  ;;  %722 = vpow2.f32 %v602_v49  ;;  %v635_v46 = vmul.f32 0.5, %v1711_v55  ;;  %v636_v60 = vmul.f32 0.5, %v2678_v36 }
 0x157   :  { %v573_v58 = vadd.f32 %v557_v22, %v2692_v61  ;;  %v650_v39 = vmul.f32 %v2693_v5, %v618_v6  ;;  %724 = vpow2.f32 %v604_v24  ;;  %v637_v29 = vmul.f32 0.5, %v2694_v31 }
 0x158   :  { %v721_v21 = vpop.eup %720  ;;  %v665_v51 = vsub.f32 %v569_v53, %v649_v19 }
 0x159   :  { %v666_v45 = vsub.f32 %v570_v4, %v650_v39  ;;  %v619_v48 = vmul.f32 %v721_v21, %v1861_v3 }
 0x15a   :  { %681 = vst [vmem:[%s2227_s2 + $0x58] sm:$0xff] %v665_v51 }
 0x15b   :  { %682 = vst [vmem:[%s2227_s2 + $0x60] sm:$0xff] %v666_v45  ;;  %v651_v20 = vmul.f32 %v635_v46, %v619_v48 }
 0x15c   :  { %v723_v55 = vpop.eup %722 }
 0x15d   :  { %v725_v47 = vpop.eup %724  ;;  %v667_v41 = vsub.f32 %v571_v32, %v651_v20  ;;  %v620_v53 = vmul.f32 %v723_v55, %v364_v44 }
 0x15e   :  { %v621_v4 = vmul.f32 %v725_v47, %v2690_v25 }
 0x15f   :  { %683 = vst [vmem:[%s2227_s2 + $0x68] sm:$0xff] %v667_v41  ;;  %v652_v3 = vmul.f32 %v636_v60, %v620_v53 }
 0x160   :  { %v653_v42 = vmul.f32 %v637_v29, %v621_v4 }
 0x161   :  { %v668_v13 = vsub.f32 %v572_v23, %v652_v3 }
 0x162   :  { %v669_v27 = vsub.f32 %v573_v58, %v653_v42 }
 0x163   :  { %684 = vst [vmem:[%s2227_s2 + $0x70] sm:$0xff] %v668_v13 }
 0x164   :  { %685 = vst [vmem:[%s2227_s2 + $0x78] sm:$0xff] %v669_v27 }

</bundles_post_ra>
